<compile_context>
chip_gen: v6e
topology: v6e:2x2x1
jax: 0.10.0
libtpu: 0.0.40
codegen_flags: <defaults>
</compile_context>

<pallas_src>
import functools

import jax
import jax.numpy as jnp
import numpy as np
from jax.experimental import pallas as pl
from jax.experimental.pallas import tpu as pltpu


# ----------------------------------------------------------------------------
# Runtime capability probes (tiny, cached)
# ----------------------------------------------------------------------------
_ROLL_OK = None
_SINGLE_BUF_OK = None


def pltpu_roll_matches_jnp_roll():
    """Confirm pltpu.roll follows jnp.roll convention on this build."""
    global _ROLL_OK
    if _ROLL_OK is not None:
        return _ROLL_OK

    def k(x_ref, o_ref):
        o_ref[...] = pltpu.roll(x_ref[...], 1, 1)

    x = jnp.arange(8 * 128, dtype=jnp.float32).reshape(8, 128)
    try:
        y = pl.pallas_call(
            k, out_shape=jax.ShapeDtypeStruct((8, 128), jnp.float32))(x)
        y = np.asarray(jax.block_until_ready(y))
        _ROLL_OK = bool(np.array_equal(y, np.roll(np.asarray(x), 1, axis=1)))
    except Exception:
        _ROLL_OK = False
    return _ROLL_OK


def single_buffered_weight_specs_supported():
    """Check pipeline_mode=pl.Buffered(1) on a constant-index input spec."""
    global _SINGLE_BUF_OK
    if _SINGLE_BUF_OK is not None:
        return _SINGLE_BUF_OK
    try:
        w_spec = pl.BlockSpec((8, 128), lambda i: (0, 0),
                              pipeline_mode=pl.Buffered(buffer_count=1))

        def k(w_ref, x_ref, o_ref):
            o_ref[...] = x_ref[...] + w_ref[...]

        w = jnp.full((8, 128), 2.0, jnp.float32)
        xx = jnp.arange(2 * 8 * 128, dtype=jnp.float32).reshape(2, 8, 128)
        y = pl.pallas_call(
            k,
            out_shape=jax.ShapeDtypeStruct((2, 8, 128), jnp.float32),
            grid=(2,),
            in_specs=[w_spec, pl.BlockSpec((None, 8, 128), lambda i: (i, 0, 0))],
            out_specs=pl.BlockSpec((None, 8, 128), lambda i: (i, 0, 0)),
        )(w, xx)
        y = np.asarray(jax.block_until_ready(y))
        _SINGLE_BUF_OK = bool(np.allclose(y, np.asarray(xx) + 2.0))
    except Exception:
        _SINGLE_BUF_OK = False
    return _SINGLE_BUF_OK


def _default_vmem_limit():
    """Generation-aware scoped VMEM limit (≈48 MiB on v7x, ≈96 MiB v5e/v6e)."""
    fallback = 48 * 1024 * 1024        # safe on every generation (64 MiB v7x)
    try:
        cap = int(pltpu.get_tpu_info().vmem_capacity_bytes)
    except Exception:
        return fallback
    if cap <= 0:
        return fallback
    return int(min(cap * 3 // 4, 100 * 1024 * 1024))


# ----------------------------------------------------------------------------
# Fused multi-stage kernel
# ----------------------------------------------------------------------------
def _make_taps(a, d, T, col_row, use_roll, need_tap_mask):
    """Left (t-d) and right (t+d) taps of `a`, zero-padded like the conv."""
    if use_roll:
        left = pltpu.roll(a, d, 1)
        right = pltpu.roll(a, T - d, 1)
        if need_tap_mask:
            # Wrapped lanes would land in valid columns -> mask them out.
            left = jnp.where(col_row >= d, left, 0.0).astype(a.dtype)
            right = jnp.where(col_row < T - d, right, 0.0).astype(a.dtype)
    else:
        # Guaranteed-correct fallback: slice + concat with a zero strip.
        zeros = jnp.zeros((a.shape[0], d), dtype=a.dtype)
        left = jnp.concatenate([zeros, a[:, :T - d]], axis=1)
        right = jnp.concatenate([a[:, d:], zeros], axis=1)
    return left, right


def _fused_mstcn_kernel(*refs, num_stages, num_layers, t_valid, compute_dtype,
                        approx_recip, use_roll, use_taps_scratch):
    """refs = [x, (w_in,b_in,wd,bd,w1,b1,w_out,b_out)*num_stages, out, taps?]."""
    x_ref = refs[0]
    if use_taps_scratch:
        taps_ref = refs[-1]
        out_ref = refs[-2]
        stage_refs = refs[1:-2]
    else:
        taps_ref = None
        out_ref = refs[-1]
        stage_refs = refs[1:-1]
    assert len(stage_refs) == 8 * num_stages

    T = x_ref.shape[-1]            # lane-padded sequence length (mult. of 128)
    C = stage_refs[0].shape[0]     # num_f_maps
    needs_mask = t_valid < T

    # (1, T) column-index row; selects broadcast it over sublanes (cheap,
    # no (C, T) int32 tile kept live in VMEM).
    col_row = jax.lax.broadcasted_iota(jnp.int32, (1, T), 1)
    valid_row = (col_row < t_valid) if needs_mask else None

    def mxu(w, v):
        # Both operands already in compute dtype; f32 accumulation on the MXU.
        return jnp.dot(w, v, preferred_element_type=jnp.float32)

    prev = None                    # previous stage logits (VMEM-resident, f32)
    for s in range(num_stages):
        (w_in, b_in, wd, bd, w1, b1, w_out, b_out) = stage_refs[8 * s: 8 * s + 8]

        if s == 0:
            inp_c = x_ref[...].astype(compute_dtype)            # (Cin, T)
        else:
            # Channel softmax of the previous stage's logits, fused in VMEM.
            m = jnp.max(prev, axis=0, keepdims=True)
            e = jnp.exp(prev - m)
            denom = jnp.sum(e, axis=0, keepdims=True)
            inp_c = (e * pl.reciprocal(denom, approx=approx_recip)
                     ).astype(compute_dtype)

        # Stage input 1x1 conv (f32 accumulation + f32 bias).
        act = mxu(w_in[...], inp_c) + b_in[...]                 # (C, T) f32
        if needs_mask:
            # Padded band must be zero before every dilated block (the t+d
            # tap reads from it, emulating the conv's zero padding).
            act = jnp.where(valid_row, act, 0.0)

        # Dilated residual layers; activation stays resident in VMEM.
        for i in range(num_layers):
            d = 2 ** i
            wd_i = wd[i]                                        # (C, 3C)
            if d >= t_valid:
                # Both neighbour taps see only conv zero padding for every
                # valid frame -> only the centre tap contributes.
                h = mxu(wd_i[:, C:2 * C], act.astype(compute_dtype)) + bd[i]
            else:
                # Wrap masks only needed when wrapped lanes can land in valid
                # columns (i.e. d reaches past the zeroed padded band).
                need_tap_mask = d > (T - t_valid)
                if use_taps_scratch:
                    # Build the (3C, T) operand directly in compute dtype in a
                    # persistent VMEM scratch — no f32 temporaries, no concat.
                    act_c = act.astype(compute_dtype)
                    left, right = _make_taps(act_c, d, T, col_row,
                                             use_roll, need_tap_mask)
                    taps_ref[0:C, :] = left
                    taps_ref[C:2 * C, :] = act_c
                    taps_ref[2 * C:3 * C, :] = right
                    taps = taps_ref[...]
                else:
                    # Alignment fallback (C not a multiple of the sublane
                    # packing): previously-validated f32 construction.
                    left, right = _make_taps(act, d, T, col_row,
                                             use_roll, need_tap_mask)
                    taps = jnp.concatenate([left, act, right],
                                           axis=0).astype(compute_dtype)
                # One stacked MXU matmul == all 3 taps of the k=3 conv.
                h = mxu(wd_i, taps) + bd[i]

            h = jnp.maximum(h, 0.0)                             # ReLU
            y = mxu(w1[i], h.astype(compute_dtype)) + b1[i]
            act = act + y                          # dropout == identity (eval)
            if needs_mask and i < num_layers - 1:
                # Re-zero padded band before the next dilated block only; the
                # last layer's garbage in the padded band never reaches a
                # valid column (w_out / softmax / w_in are column-local) and
                # padded columns are sliced off in the wrapper.
                act = jnp.where(valid_row, act, 0.0)

        # Stage output 1x1 conv written straight into the stacked output.
        prev = mxu(w_out[...], act.astype(compute_dtype)) + b_out[...]
        out_ref[s] = prev.astype(out_ref.dtype)


# ----------------------------------------------------------------------------
# Wrapper
# ----------------------------------------------------------------------------
def _const_spec(shape, single_buffer):
    """Whole-array BlockSpec, identical block for every grid step."""
    nd = len(shape)
    if nd == 2:
        index_map = lambda b: (0, 0)
    elif nd == 3:
        index_map = lambda b: (0, 0, 0)
    else:
        raise ValueError(f"unexpected weight rank: {shape}")
    if single_buffer:
        try:
            # Weight blocks never change across the batch grid -> single
            # buffer them (halves their VMEM, drops redundant DMA).
            return pl.BlockSpec(shape, index_map,
                                pipeline_mode=pl.Buffered(buffer_count=1))
        except Exception:
            pass
    return pl.BlockSpec(shape, index_map)


def multi_stage_forward(x, stage_params, *, compute_dtype=jnp.bfloat16,
                        approx_recip=None, use_roll=None, out_dtype=None,
                        vmem_limit_bytes=None):
    """MS-TCN forward: (B, dim, T) -> (num_stages, B, num_classes, T)."""
    B, dim_in, T = x.shape
    num_stages = len(stage_params)
    num_layers = int(stage_params[0]["wd"].shape[0])
    num_classes = int(stage_params[-1]["w_out"].shape[0])
    C = int(stage_params[0]["w_in"].shape[0])

    if approx_recip is None:
        approx_recip = np.dtype(compute_dtype) != np.dtype(jnp.float32)
    if use_roll is None:
        use_roll = pltpu_roll_matches_jnp_roll()
    if out_dtype is None:
        out_dtype = x.dtype
    if vmem_limit_bytes is None:
        vmem_limit_bytes = _default_vmem_limit()

    # Lane-dense time axis: pad T to a multiple of 128.
    T_pad = max(128, ((T + 127) // 128) * 128)
    if T_pad != T:
        x = jnp.pad(x, ((0, 0), (0, 0), (0, T_pad - T)))

    # Direct band stores into the (3C, T) tap scratch need C aligned to the
    # sublane packing of the compute dtype (8 rows for 4-byte, 16 for 2-byte).
    pack = 8 * (4 // np.dtype(compute_dtype).itemsize)
    use_taps_scratch = (C % pack == 0)

    # Pre-cast matmul weights on the host (biases stay f32 for f32 accumulate).
    cast_names = ("w_in", "wd", "w1", "w_out")
    weight_args = []
    for p in stage_params:
        for name in ("w_in", "b_in", "wd", "bd", "w1", "b1", "w_out", "b_out"):
            a = p[name]
            if name in cast_names:
                a = a.astype(compute_dtype)
            weight_args.append(a)

    scratch_shapes = []
    if use_taps_scratch:
        scratch_shapes.append(pltpu.VMEM((3 * C, T_pad), compute_dtype))

    kernel = functools.partial(
        _fused_mstcn_kernel,
        num_stages=num_stages, num_layers=num_layers, t_valid=T,
        compute_dtype=compute_dtype, approx_recip=approx_recip,
        use_roll=use_roll, use_taps_scratch=use_taps_scratch)

    x_spec = pl.BlockSpec((None, dim_in, T_pad), lambda b: (b, 0, 0))
    out_spec = pl.BlockSpec((num_stages, None, num_classes, T_pad),
                            lambda b: (0, b, 0, 0))

    def _call(single_buffer):
        in_specs = [x_spec] + [_const_spec(tuple(a.shape), single_buffer)
                               for a in weight_args]
        return pl.pallas_call(
            kernel,
            out_shape=jax.ShapeDtypeStruct(
                (num_stages, B, num_classes, T_pad), out_dtype),
            grid=(B,),
            in_specs=in_specs,
            out_specs=out_spec,
            scratch_shapes=scratch_shapes,
            compiler_params=pltpu.CompilerParams(
                dimension_semantics=("parallel",),
                vmem_limit_bytes=int(vmem_limit_bytes)),
        )(x, *weight_args)

    single_buffer = single_buffered_weight_specs_supported()
    try:
        out = _call(single_buffer)
    except Exception:
        if not single_buffer:
            raise
        out = _call(False)          # safety net: retry with default buffering

    if T_pad != T:
        out = out[..., :T]
    return out


# ----------------------------------------------------------------------------
# Parameter construction (Conv1d-style init, dilated weights pre-stacked)
# ----------------------------------------------------------------------------
def _init_conv(key, cout, cin, ksize):
    kw, kb = jax.random.split(key)
    bound = 1.0 / np.sqrt(cin * ksize)
    w = jax.random.uniform(kw, (cout, cin, ksize), jnp.float32, -bound, bound)
    b = jax.random.uniform(kb, (cout, 1), jnp.float32, -bound, bound)
    return w, b


def init_single_stage(key, num_layers, num_f_maps, dim, num_classes):
    keys = jax.random.split(key, num_layers * 2 + 2)
    w_in, b_in = _init_conv(keys[0], num_f_maps, dim, 1)
    wd_l, bd_l, w1_l, b1_l = [], [], [], []
    for i in range(num_layers):
        wd, bd = _init_conv(keys[1 + 2 * i], num_f_maps, num_f_maps, 3)
        w1, b1 = _init_conv(keys[2 + 2 * i], num_f_maps, num_f_maps, 1)
        # Stack the 3 taps along Cin: (C, 3C), taps ordered [t-d, t, t+d].
        wd_l.append(jnp.concatenate([wd[:, :, 0], wd[:, :, 1], wd[:, :, 2]],
                                    axis=1))
        bd_l.append(bd)
        w1_l.append(w1[:, :, 0])
        b1_l.append(b1)
    w_out, b_out = _init_conv(keys[-1], num_classes, num_f_maps, 1)
    return dict(w_in=w_in[:, :, 0], b_in=b_in,
                wd=jnp.stack(wd_l), bd=jnp.stack(bd_l),
                w1=jnp.stack(w1_l), b1=jnp.stack(b1_l),
                w_out=w_out[:, :, 0], b_out=b_out)


# ----------------------------------------------------------------------------
# Pure-JAX reference (optionally mimicking bf16 operand rounding)
# ----------------------------------------------------------------------------
def _q(a, cd):
    return a.astype(cd).astype(jnp.float32)


def _ref_conv1x1(x, w, b, cd):
    return jnp.einsum("oc,bct->bot", _q(w, cd), _q(x, cd)) + b[None]


def _ref_single_stage(x, p, cd):
    out = _ref_conv1x1(x, p["w_in"], p["b_in"], cd)
    C = p["w_in"].shape[0]
    for i in range(p["wd"].shape[0]):
        d = 2 ** i
        T = out.shape[-1]
        wd = p["wd"][i]
        left = jnp.pad(out, ((0, 0), (0, 0), (d, 0)))[:, :, :T]     # x[t-d]
        right = jnp.pad(out, ((0, 0), (0, 0), (0, d)))[:, :, d:]    # x[t+d]
        h = (jnp.einsum("oc,bct->bot", _q(wd[:, :C], cd), _q(left, cd))
             + jnp.einsum("oc,bct->bot", _q(wd[:, C:2 * C], cd), _q(out, cd))
             + jnp.einsum("oc,bct->bot", _q(wd[:, 2 * C:], cd), _q(right, cd))
             + p["bd"][i][None])
        h = jnp.maximum(h, 0.0)
        y = jnp.einsum("oc,bct->bot", _q(p["w1"][i], cd), _q(h, cd)) + p["b1"][i][None]
        out = out + y
    return _ref_conv1x1(out, p["w_out"], p["b_out"], cd)


def _ref_multi_stage(x, stage_params, cd=jnp.float32):
    out = _ref_single_stage(x, stage_params[0], cd)
    outs = [out]
    for p in stage_params[1:]:
        out = _ref_single_stage(jax.nn.softmax(out, axis=1), p, cd)
        outs.append(out)
    return jnp.stack(outs, axis=0)


# ----------------------------------------------------------------------------
if __name__ == "__main__":
    num_layers = 3
    num_stages = 2
    num_f_maps = 16        # 16-aligned -> exercises the bf16 tap-scratch path
    dim = 4
    num_classes = 4
    B, T = 2, 200          # T not a multiple of 128 -> exercises padding/masking

    key = jax.random.PRNGKey(0)
    k_x, k_p = jax.random.split(key)
    x = jax.random.normal(k_x, (B, dim, T), jnp.float32)

    stage_keys = jax.random.split(k_p, num_stages)
    stage_params = [init_single_stage(stage_keys[0], num_layers, num_f_maps,
                                      dim, num_classes)]
    for s in range(1, num_stages):
        stage_params.append(init_single_stage(stage_keys[s], num_layers,
                                              num_f_maps, num_classes,
                                              num_classes))

    # 1) f32 compute path: validated tightly against a pure-JAX reference.
    out_f32 = jax.block_until_ready(
        multi_stage_forward(x, stage_params, compute_dtype=jnp.float32))
    ref_f32 = _ref_multi_stage(x, stage_params, jnp.float32)
    np.testing.assert_allclose(np.asarray(out_f32), np.asarray(ref_f32),
                               rtol=1e-4, atol=1e-4)

    # 2) bf16 MXU fast path (f32 accumulation): validated against a reference
    #    that applies the same bf16 operand rounding.
    out_bf16 = jax.block_until_ready(
        multi_stage_forward(x, stage_params, compute_dtype=jnp.bfloat16))
    ref_bf16 = _ref_multi_stage(x, stage_params, jnp.bfloat16)
    np.testing.assert_allclose(np.asarray(out_bf16), np.asarray(ref_bf16),
                               rtol=2e-2, atol=2e-2)

    assert out_f32.shape == (num_stages, B, num_classes, T)
    assert out_bf16.shape == (num_stages, B, num_classes, T)
    print("KERNEL_OK")
</pallas_src>

<mosaic_0001>
module attributes {stable_mosaic.version = 11 : i64} {
  func.func @k(%arg0: memref<8x128xf32, #tpu.memory_space<vmem>>, %arg1: memref<8x128xf32, #tpu.memory_space<vmem>>) attributes {dimension_semantics = [], scalar_prefetch = 0 : i64, scratch_operands = 0 : i64, tpu.core_type = #tpu.core_type<tc>} {
    %c0 = arith.constant 0 : index
    %c0_0 = arith.constant 0 : index
    %0 = vector.load %arg0[%c0, %c0_0] : memref<8x128xf32, #tpu.memory_space<vmem>>, vector<8x128xf32>
    %c1_i32 = arith.constant 1 : i32
    %1 = tpu.dynamic_rotate %0 by %c1_i32 dim 1 : vector<8x128xf32>, i32 -> vector<8x128xf32>
    %c0_1 = arith.constant 0 : index
    %c0_2 = arith.constant 0 : index
    %2 = vector.load %arg1[%c0_1, %c0_2] : memref<8x128xf32, #tpu.memory_space<vmem>>, vector<8x128xf32>
    tpu.vector_store %arg1[%c0_1, %c0_2], %1 {strides = array<i32>} : memref<8x128xf32, #tpu.memory_space<vmem>>, vector<8x128xf32>,
    return
  }
}

module attributes {stable_mosaic.version = 11 : i64} {
  func.func @k(%arg0: i32, %arg1: memref<8x128xf32, #tpu.memory_space<vmem>>, %arg2: memref<1x8x128xf32, #tpu.memory_space<vmem>>, %arg3: memref<1x8x128xf32, #tpu.memory_space<vmem>>) attributes {dimension_semantics = [#tpu.dimension_semantics<arbitrary>], iteration_bounds = array<i64: 2>, scalar_prefetch = 0 : i64, scratch_operands = 0 : i64, tpu.core_type = #tpu.core_type<tc>, window_params = [{pipeline_mode = #tpu.pipeline_mode<synchronous>, transform_indices = @transform_0, window_bounds = array<i64: 8, 128>}, {transform_indices = @transform_1, window_bounds = array<i64: 1, 8, 128>}, {transform_indices = @transform_2, window_bounds = array<i64: 1, 8, 128>}]} {
    %c0 = arith.constant 0 : index
    %c0_0 = arith.constant 0 : index
    %c0_1 = arith.constant 0 : index
    %0 = vector.load %arg2[%c0, %c0_0, %c0_1] : memref<1x8x128xf32, #tpu.memory_space<vmem>>, vector<1x8x128xf32>
    %1 = vector.shape_cast %0 : vector<1x8x128xf32> to vector<8x128xf32>
    %c0_2 = arith.constant 0 : index
    %c0_3 = arith.constant 0 : index
    %2 = vector.load %arg1[%c0_2, %c0_3] : memref<8x128xf32, #tpu.memory_space<vmem>>, vector<8x128xf32>
    %3 = arith.addf %1, %2 : vector<8x128xf32>
    %c0_4 = arith.constant 0 : index
    %c0_5 = arith.constant 0 : index
    %c0_6 = arith.constant 0 : index
    %4 = vector.load %arg3[%c0_4, %c0_5, %c0_6] : memref<1x8x128xf32, #tpu.memory_space<vmem>>, vector<1x8x128xf32>
    %5 = vector.shape_cast %4 : vector<1x8x128xf32> to vector<8x128xf32>
    %6 = vector.shape_cast %3 : vector<8x128xf32> to vector<1x8x128xf32>
    tpu.vector_store %arg3[%c0_4, %c0_5, %c0_6], %6 {strides = array<i32>} : memref<1x8x128xf32, #tpu.memory_space<vmem>>, vector<1x8x128xf32>,
    return
  }
  func.func @transform_0(%arg0: i32) -> (i32, i32) {
    %c0_i32 = arith.constant 0 : i32
    %c0_i32_0 = arith.constant 0 : i32
    %c0_i32_1 = arith.constant 0 : i32
    return %c0_i32, %c0_i32_0 : i32, i32
  }
  func.func @transform_1(%arg0: i32) -> (i32, i32, i32) {
    %c0_i32 = arith.constant 0 : i32
    %c0_i32_0 = arith.constant 0 : i32
    %c0_i32_1 = arith.constant 0 : i32
    return %arg0, %c0_i32, %c0_i32_0 : i32, i32, i32
  }
  func.func @transform_2(%arg0: i32) -> (i32, i32, i32) {
    %c0_i32 = arith.constant 0 : i32
    %c0_i32_0 = arith.constant 0 : i32
    %c0_i32_1 = arith.constant 0 : i32
    return %arg0, %c0_i32, %c0_i32_0 : i32, i32, i32
  }
}

module attributes {stable_mosaic.version = 11 : i64} {
  func.func @_fused_mstcn_kernel(%arg0: i32, %arg1: memref<1x4x256xf32, #tpu.memory_space<vmem>>, %arg2: memref<16x4xf32, #tpu.memory_space<vmem>>, %arg3: memref<16x1xf32, #tpu.memory_space<vmem>>, %arg4: memref<3x16x48xf32, #tpu.memory_space<vmem>>, %arg5: memref<3x16x1xf32, #tpu.memory_space<vmem>>, %arg6: memref<3x16x16xf32, #tpu.memory_space<vmem>>, %arg7: memref<3x16x1xf32, #tpu.memory_space<vmem>>, %arg8: memref<4x16xf32, #tpu.memory_space<vmem>>, %arg9: memref<4x1xf32, #tpu.memory_space<vmem>>, %arg10: memref<16x4xf32, #tpu.memory_space<vmem>>, %arg11: memref<16x1xf32, #tpu.memory_space<vmem>>, %arg12: memref<3x16x48xf32, #tpu.memory_space<vmem>>, %arg13: memref<3x16x1xf32, #tpu.memory_space<vmem>>, %arg14: memref<3x16x16xf32, #tpu.memory_space<vmem>>, %arg15: memref<3x16x1xf32, #tpu.memory_space<vmem>>, %arg16: memref<4x16xf32, #tpu.memory_space<vmem>>, %arg17: memref<4x1xf32, #tpu.memory_space<vmem>>, %arg18: memref<2x1x4x256xf32, #tpu.memory_space<vmem>>, %arg19: memref<48x256xf32, #tpu.memory_space<vmem>>) attributes {dimension_semantics = [#tpu.dimension_semantics<parallel>], iteration_bounds = array<i64: 2>, scalar_prefetch = 0 : i64, scratch_operands = 1 : i64, tpu.core_type = #tpu.core_type<tc>, window_params = [{transform_indices = @transform_0, window_bounds = array<i64: 1, 4, 256>}, {pipeline_mode = #tpu.pipeline_mode<synchronous>, transform_indices = @transform_1, window_bounds = array<i64: 16, 4>}, {pipeline_mode = #tpu.pipeline_mode<synchronous>, transform_indices = @transform_2, window_bounds = array<i64: 16, 1>}, {pipeline_mode = #tpu.pipeline_mode<synchronous>, transform_indices = @transform_3, window_bounds = array<i64: 3, 16, 48>}, {pipeline_mode = #tpu.pipeline_mode<synchronous>, transform_indices = @transform_4, window_bounds = array<i64: 3, 16, 1>}, {pipeline_mode = #tpu.pipeline_mode<synchronous>, transform_indices = @transform_5, window_bounds = array<i64: 3, 16, 16>}, {pipeline_mode = #tpu.pipeline_mode<synchronous>, transform_indices = @transform_6, window_bounds = array<i64: 3, 16, 1>}, {pipeline_mode = #tpu.pipeline_mode<synchronous>, transform_indices = @transform_7, window_bounds = array<i64: 4, 16>}, {pipeline_mode = #tpu.pipeline_mode<synchronous>, transform_indices = @transform_8, window_bounds = array<i64: 4, 1>}, {pipeline_mode = #tpu.pipeline_mode<synchronous>, transform_indices = @transform_9, window_bounds = array<i64: 16, 4>}, {pipeline_mode = #tpu.pipeline_mode<synchronous>, transform_indices = @transform_10, window_bounds = array<i64: 16, 1>}, {pipeline_mode = #tpu.pipeline_mode<synchronous>, transform_indices = @transform_11, window_bounds = array<i64: 3, 16, 48>}, {pipeline_mode = #tpu.pipeline_mode<synchronous>, transform_indices = @transform_12, window_bounds = array<i64: 3, 16, 1>}, {pipeline_mode = #tpu.pipeline_mode<synchronous>, transform_indices = @transform_13, window_bounds = array<i64: 3, 16, 16>}, {pipeline_mode = #tpu.pipeline_mode<synchronous>, transform_indices = @transform_14, window_bounds = array<i64: 3, 16, 1>}, {pipeline_mode = #tpu.pipeline_mode<synchronous>, transform_indices = @transform_15, window_bounds = array<i64: 4, 16>}, {pipeline_mode = #tpu.pipeline_mode<synchronous>, transform_indices = @transform_16, window_bounds = array<i64: 4, 1>}, {transform_indices = @transform_17, window_bounds = array<i64: 2, 1, 4, 256>}]} {
    %0 = tpu.iota {dimensions = array<i32: 1>} : vector<1x256xi32>
    %c200_i32 = arith.constant 200 : i32
    %1 = vector.broadcast %c200_i32 : i32 to vector<1x256xi32>
    %2 = arith.cmpi slt, %0, %1 : vector<1x256xi32>
    %c0 = arith.constant 0 : index
    %c0_0 = arith.constant 0 : index
    %c0_1 = arith.constant 0 : index
    %3 = vector.load %arg1[%c0, %c0_0, %c0_1] : memref<1x4x256xf32, #tpu.memory_space<vmem>>, vector<1x4x256xf32>
    %4 = vector.shape_cast %3 : vector<1x4x256xf32> to vector<4x256xf32>
    %c0_2 = arith.constant 0 : index
    %c0_3 = arith.constant 0 : index
    %5 = vector.load %arg2[%c0_2, %c0_3] : memref<16x4xf32, #tpu.memory_space<vmem>>, vector<16x4xf32>
    %cst = arith.constant dense<0.000000e+00> : vector<16x256xf32>
    %6 = tpu.matmul %5, %4, %cst {dimension_numbers = #tpu.dot_dimension_numbers<[1], [0], [0], [1], [0, 0, 1, 1], [], []>} : vector<16x4xf32>, vector<4x256xf32>, vector<16x256xf32> -> vector<16x256xf32>
    %c0_4 = arith.constant 0 : index
    %c0_5 = arith.constant 0 : index
    %7 = vector.load %arg3[%c0_4, %c0_5] : memref<16x1xf32, #tpu.memory_space<vmem>>, vector<16x1xf32>
    %8 = vector.broadcast %7 : vector<16x1xf32> to vector<16x256xf32>
    %9 = arith.addf %6, %8 : vector<16x256xf32>
    %cst_6 = arith.constant 0.000000e+00 : f32
    %10 = vector.shape_cast %2 : vector<1x256xi1> to vector<1x256xi1>
    %11 = vector.broadcast %10 : vector<1x256xi1> to vector<16x256xi1>
    %12 = vector.broadcast %cst_6 : f32 to vector<16x256xf32>
    %13 = arith.select %11, %9, %12 : vector<16x256xi1>, vector<16x256xf32>
    %c0_7 = arith.constant 0 : index
    %c0_8 = arith.constant 0 : index
    %c0_9 = arith.constant 0 : index
    %14 = vector.load %arg4[%c0_7, %c0_8, %c0_9] : memref<3x16x48xf32, #tpu.memory_space<vmem>>, vector<1x16x48xf32>
    %15 = vector.shape_cast %14 : vector<1x16x48xf32> to vector<16x48xf32>
    %cst_10 = arith.constant 0.000000e+00 : f32
    %16 = vector.broadcast %cst_10 : f32 to vector<16x1xf32>
    %17 = vector.extract_strided_slice %13 {offsets = [0, 0], sizes = [16, 255], strides = [1, 1]} : vector<16x256xf32> to vector<16x255xf32>
    %18 = tpu.concatenate %16, %17 in 1 : vector<16x1xf32>, vector<16x255xf32> -> vector<16x256xf32>
    %19 = vector.extract_strided_slice %13 {offsets = [0, 1], sizes = [16, 255], strides = [1, 1]} : vector<16x256xf32> to vector<16x255xf32>
    %20 = tpu.concatenate %19, %16 in 1 : vector<16x255xf32>, vector<16x1xf32> -> vector<16x256xf32>
    %c0_11 = arith.constant 0 : index
    %c0_12 = arith.constant 0 : index
    %21 = vector.load %arg19[%c0_11, %c0_12] : memref<48x256xf32, #tpu.memory_space<vmem>>, vector<16x256xf32>
    tpu.vector_store %arg19[%c0_11, %c0_12], %18 {strides = array<i32>} : memref<48x256xf32, #tpu.memory_space<vmem>>, vector<16x256xf32>,
    %c16 = arith.constant 16 : index
    %c0_13 = arith.constant 0 : index
    %22 = vector.load %arg19[%c16, %c0_13] : memref<48x256xf32, #tpu.memory_space<vmem>>, vector<16x256xf32>
    tpu.vector_store %arg19[%c16, %c0_13], %13 {strides = array<i32>} : memref<48x256xf32, #tpu.memory_space<vmem>>, vector<16x256xf32>,
    %c32 = arith.constant 32 : index
    %c0_14 = arith.constant 0 : index
    %23 = vector.load %arg19[%c32, %c0_14] : memref<48x256xf32, #tpu.memory_space<vmem>>, vector<16x256xf32>
    tpu.vector_store %arg19[%c32, %c0_14], %20 {strides = array<i32>} : memref<48x256xf32, #tpu.memory_space<vmem>>, vector<16x256xf32>,
    %c0_15 = arith.constant 0 : index
    %c0_16 = arith.constant 0 : index
    %24 = vector.load %arg19[%c0_15, %c0_16] : memref<48x256xf32, #tpu.memory_space<vmem>>, vector<48x256xf32>
    %cst_17 = arith.constant dense<0.000000e+00> : vector<16x256xf32>
    %25 = tpu.matmul %15, %24, %cst_17 {dimension_numbers = #tpu.dot_dimension_numbers<[1], [0], [0], [1], [0, 0, 1, 1], [], []>} : vector<16x48xf32>, vector<48x256xf32>, vector<16x256xf32> -> vector<16x256xf32>
    %c0_18 = arith.constant 0 : index
    %c0_19 = arith.constant 0 : index
    %c0_20 = arith.constant 0 : index
    %26 = vector.load %arg5[%c0_18, %c0_19, %c0_20] : memref<3x16x1xf32, #tpu.memory_space<vmem>>, vector<1x16x1xf32>
    %27 = vector.shape_cast %26 : vector<1x16x1xf32> to vector<16x1xf32>
    %28 = vector.broadcast %27 : vector<16x1xf32> to vector<16x256xf32>
    %29 = arith.addf %25, %28 : vector<16x256xf32>
    %cst_21 = arith.constant 0.000000e+00 : f32
    %30 = vector.broadcast %cst_21 : f32 to vector<16x256xf32>
    %31 = arith.maximumf %29, %30 : vector<16x256xf32>
    %c0_22 = arith.constant 0 : index
    %c0_23 = arith.constant 0 : index
    %c0_24 = arith.constant 0 : index
    %32 = vector.load %arg6[%c0_22, %c0_23, %c0_24] : memref<3x16x16xf32, #tpu.memory_space<vmem>>, vector<1x16x16xf32>
    %33 = vector.shape_cast %32 : vector<1x16x16xf32> to vector<16x16xf32>
    %cst_25 = arith.constant dense<0.000000e+00> : vector<16x256xf32>
    %34 = tpu.matmul %33, %31, %cst_25 {dimension_numbers = #tpu.dot_dimension_numbers<[1], [0], [0], [1], [0, 0, 1, 1], [], []>} : vector<16x16xf32>, vector<16x256xf32>, vector<16x256xf32> -> vector<16x256xf32>
    %c0_26 = arith.constant 0 : index
    %c0_27 = arith.constant 0 : index
    %c0_28 = arith.constant 0 : index
    %35 = vector.load %arg7[%c0_26, %c0_27, %c0_28] : memref<3x16x1xf32, #tpu.memory_space<vmem>>, vector<1x16x1xf32>
    %36 = vector.shape_cast %35 : vector<1x16x1xf32> to vector<16x1xf32>
    %37 = vector.broadcast %36 : vector<16x1xf32> to vector<16x256xf32>
    %38 = arith.addf %34, %37 : vector<16x256xf32>
    %39 = arith.addf %13, %38 : vector<16x256xf32>
    %cst_29 = arith.constant 0.000000e+00 : f32
    %40 = vector.shape_cast %2 : vector<1x256xi1> to vector<1x256xi1>
    %41 = vector.broadcast %40 : vector<1x256xi1> to vector<16x256xi1>
    %42 = vector.broadcast %cst_29 : f32 to vector<16x256xf32>
    %43 = arith.select %41, %39, %42 : vector<16x256xi1>, vector<16x256xf32>
    %c1 = arith.constant 1 : index
    %c0_30 = arith.constant 0 : index
    %c0_31 = arith.constant 0 : index
    %44 = vector.load %arg4[%c1, %c0_30, %c0_31] : memref<3x16x48xf32, #tpu.memory_space<vmem>>, vector<1x16x48xf32>
    %45 = vector.shape_cast %44 : vector<1x16x48xf32> to vector<16x48xf32>
    %cst_32 = arith.constant 0.000000e+00 : f32
    %46 = vector.broadcast %cst_32 : f32 to vector<16x2xf32>
    %47 = vector.extract_strided_slice %43 {offsets = [0, 0], sizes = [16, 254], strides = [1, 1]} : vector<16x256xf32> to vector<16x254xf32>
    %48 = tpu.concatenate %46, %47 in 1 : vector<16x2xf32>, vector<16x254xf32> -> vector<16x256xf32>
    %49 = vector.extract_strided_slice %43 {offsets = [0, 2], sizes = [16, 254], strides = [1, 1]} : vector<16x256xf32> to vector<16x254xf32>
    %50 = tpu.concatenate %49, %46 in 1 : vector<16x254xf32>, vector<16x2xf32> -> vector<16x256xf32>
    %c0_33 = arith.constant 0 : index
    %c0_34 = arith.constant 0 : index
    %51 = vector.load %arg19[%c0_33, %c0_34] : memref<48x256xf32, #tpu.memory_space<vmem>>, vector<16x256xf32>
    tpu.vector_store %arg19[%c0_33, %c0_34], %48 {strides = array<i32>} : memref<48x256xf32, #tpu.memory_space<vmem>>, vector<16x256xf32>,
    %c16_35 = arith.constant 16 : index
    %c0_36 = arith.constant 0 : index
    %52 = vector.load %arg19[%c16_35, %c0_36] : memref<48x256xf32, #tpu.memory_space<vmem>>, vector<16x256xf32>
    tpu.vector_store %arg19[%c16_35, %c0_36], %43 {strides = array<i32>} : memref<48x256xf32, #tpu.memory_space<vmem>>, vector<16x256xf32>,
    %c32_37 = arith.constant 32 : index
    %c0_38 = arith.constant 0 : index
    %53 = vector.load %arg19[%c32_37, %c0_38] : memref<48x256xf32, #tpu.memory_space<vmem>>, vector<16x256xf32>
    tpu.vector_store %arg19[%c32_37, %c0_38], %50 {strides = array<i32>} : memref<48x256xf32, #tpu.memory_space<vmem>>, vector<16x256xf32>,
    %c0_39 = arith.constant 0 : index
    %c0_40 = arith.constant 0 : index
    %54 = vector.load %arg19[%c0_39, %c0_40] : memref<48x256xf32, #tpu.memory_space<vmem>>, vector<48x256xf32>
    %cst_41 = arith.constant dense<0.000000e+00> : vector<16x256xf32>
    %55 = tpu.matmul %45, %54, %cst_41 {dimension_numbers = #tpu.dot_dimension_numbers<[1], [0], [0], [1], [0, 0, 1, 1], [], []>} : vector<16x48xf32>, vector<48x256xf32>, vector<16x256xf32> -> vector<16x256xf32>
    %c1_42 = arith.constant 1 : index
    %c0_43 = arith.constant 0 : index
    %c0_44 = arith.constant 0 : index
    %56 = vector.load %arg5[%c1_42, %c0_43, %c0_44] : memref<3x16x1xf32, #tpu.memory_space<vmem>>, vector<1x16x1xf32>
    %57 = vector.shape_cast %56 : vector<1x16x1xf32> to vector<16x1xf32>
    %58 = vector.broadcast %57 : vector<16x1xf32> to vector<16x256xf32>
    %59 = arith.addf %55, %58 : vector<16x256xf32>
    %cst_45 = arith.constant 0.000000e+00 : f32
    %60 = vector.broadcast %cst_45 : f32 to vector<16x256xf32>
    %61 = arith.maximumf %59, %60 : vector<16x256xf32>
    %c1_46 = arith.constant 1 : index
    %c0_47 = arith.constant 0 : index
    %c0_48 = arith.constant 0 : index
    %62 = vector.load %arg6[%c1_46, %c0_47, %c0_48] : memref<3x16x16xf32, #tpu.memory_space<vmem>>, vector<1x16x16xf32>
    %63 = vector.shape_cast %62 : vector<1x16x16xf32> to vector<16x16xf32>
    %cst_49 = arith.constant dense<0.000000e+00> : vector<16x256xf32>
    %64 = tpu.matmul %63, %61, %cst_49 {dimension_numbers = #tpu.dot_dimension_numbers<[1], [0], [0], [1], [0, 0, 1, 1], [], []>} : vector<16x16xf32>, vector<16x256xf32>, vector<16x256xf32> -> vector<16x256xf32>
    %c1_50 = arith.constant 1 : index
    %c0_51 = arith.constant 0 : index
    %c0_52 = arith.constant 0 : index
    %65 = vector.load %arg7[%c1_50, %c0_51, %c0_52] : memref<3x16x1xf32, #tpu.memory_space<vmem>>, vector<1x16x1xf32>
    %66 = vector.shape_cast %65 : vector<1x16x1xf32> to vector<16x1xf32>
    %67 = vector.broadcast %66 : vector<16x1xf32> to vector<16x256xf32>
    %68 = arith.addf %64, %67 : vector<16x256xf32>
    %69 = arith.addf %43, %68 : vector<16x256xf32>
    %cst_53 = arith.constant 0.000000e+00 : f32
    %70 = vector.shape_cast %2 : vector<1x256xi1> to vector<1x256xi1>
    %71 = vector.broadcast %70 : vector<1x256xi1> to vector<16x256xi1>
    %72 = vector.broadcast %cst_53 : f32 to vector<16x256xf32>
    %73 = arith.select %71, %69, %72 : vector<16x256xi1>, vector<16x256xf32>
    %c2 = arith.constant 2 : index
    %c0_54 = arith.constant 0 : index
    %c0_55 = arith.constant 0 : index
    %74 = vector.load %arg4[%c2, %c0_54, %c0_55] : memref<3x16x48xf32, #tpu.memory_space<vmem>>, vector<1x16x48xf32>
    %75 = vector.shape_cast %74 : vector<1x16x48xf32> to vector<16x48xf32>
    %cst_56 = arith.constant 0.000000e+00 : f32
    %76 = vector.broadcast %cst_56 : f32 to vector<16x4xf32>
    %77 = vector.extract_strided_slice %73 {offsets = [0, 0], sizes = [16, 252], strides = [1, 1]} : vector<16x256xf32> to vector<16x252xf32>
    %78 = tpu.concatenate %76, %77 in 1 : vector<16x4xf32>, vector<16x252xf32> -> vector<16x256xf32>
    %79 = vector.extract_strided_slice %73 {offsets = [0, 4], sizes = [16, 252], strides = [1, 1]} : vector<16x256xf32> to vector<16x252xf32>
    %80 = tpu.concatenate %79, %76 in 1 : vector<16x252xf32>, vector<16x4xf32> -> vector<16x256xf32>
    %c0_57 = arith.constant 0 : index
    %c0_58 = arith.constant 0 : index
    %81 = vector.load %arg19[%c0_57, %c0_58] : memref<48x256xf32, #tpu.memory_space<vmem>>, vector<16x256xf32>
    tpu.vector_store %arg19[%c0_57, %c0_58], %78 {strides = array<i32>} : memref<48x256xf32, #tpu.memory_space<vmem>>, vector<16x256xf32>,
    %c16_59 = arith.constant 16 : index
    %c0_60 = arith.constant 0 : index
    %82 = vector.load %arg19[%c16_59, %c0_60] : memref<48x256xf32, #tpu.memory_space<vmem>>, vector<16x256xf32>
    tpu.vector_store %arg19[%c16_59, %c0_60], %73 {strides = array<i32>} : memref<48x256xf32, #tpu.memory_space<vmem>>, vector<16x256xf32>,
    %c32_61 = arith.constant 32 : index
    %c0_62 = arith.constant 0 : index
    %83 = vector.load %arg19[%c32_61, %c0_62] : memref<48x256xf32, #tpu.memory_space<vmem>>, vector<16x256xf32>
    tpu.vector_store %arg19[%c32_61, %c0_62], %80 {strides = array<i32>} : memref<48x256xf32, #tpu.memory_space<vmem>>, vector<16x256xf32>,
    %c0_63 = arith.constant 0 : index
    %c0_64 = arith.constant 0 : index
    %84 = vector.load %arg19[%c0_63, %c0_64] : memref<48x256xf32, #tpu.memory_space<vmem>>, vector<48x256xf32>
    %cst_65 = arith.constant dense<0.000000e+00> : vector<16x256xf32>
    %85 = tpu.matmul %75, %84, %cst_65 {dimension_numbers = #tpu.dot_dimension_numbers<[1], [0], [0], [1], [0, 0, 1, 1], [], []>} : vector<16x48xf32>, vector<48x256xf32>, vector<16x256xf32> -> vector<16x256xf32>
    %c2_66 = arith.constant 2 : index
    %c0_67 = arith.constant 0 : index
    %c0_68 = arith.constant 0 : index
    %86 = vector.load %arg5[%c2_66, %c0_67, %c0_68] : memref<3x16x1xf32, #tpu.memory_space<vmem>>, vector<1x16x1xf32>
    %87 = vector.shape_cast %86 : vector<1x16x1xf32> to vector<16x1xf32>
    %88 = vector.broadcast %87 : vector<16x1xf32> to vector<16x256xf32>
    %89 = arith.addf %85, %88 : vector<16x256xf32>
    %cst_69 = arith.constant 0.000000e+00 : f32
    %90 = vector.broadcast %cst_69 : f32 to vector<16x256xf32>
    %91 = arith.maximumf %89, %90 : vector<16x256xf32>
    %c2_70 = arith.constant 2 : index
    %c0_71 = arith.constant 0 : index
    %c0_72 = arith.constant 0 : index
    %92 = vector.load %arg6[%c2_70, %c0_71, %c0_72] : memref<3x16x16xf32, #tpu.memory_space<vmem>>, vector<1x16x16xf32>
    %93 = vector.shape_cast %92 : vector<1x16x16xf32> to vector<16x16xf32>
    %cst_73 = arith.constant dense<0.000000e+00> : vector<16x256xf32>
    %94 = tpu.matmul %93, %91, %cst_73 {dimension_numbers = #tpu.dot_dimension_numbers<[1], [0], [0], [1], [0, 0, 1, 1], [], []>} : vector<16x16xf32>, vector<16x256xf32>, vector<16x256xf32> -> vector<16x256xf32>
    %c2_74 = arith.constant 2 : index
    %c0_75 = arith.constant 0 : index
    %c0_76 = arith.constant 0 : index
    %95 = vector.load %arg7[%c2_74, %c0_75, %c0_76] : memref<3x16x1xf32, #tpu.memory_space<vmem>>, vector<1x16x1xf32>
    %96 = vector.shape_cast %95 : vector<1x16x1xf32> to vector<16x1xf32>
    %97 = vector.broadcast %96 : vector<16x1xf32> to vector<16x256xf32>
    %98 = arith.addf %94, %97 : vector<16x256xf32>
    %99 = arith.addf %73, %98 : vector<16x256xf32>
    %c0_77 = arith.constant 0 : index
    %c0_78 = arith.constant 0 : index
    %100 = vector.load %arg8[%c0_77, %c0_78] : memref<4x16xf32, #tpu.memory_space<vmem>>, vector<4x16xf32>
    %cst_79 = arith.constant dense<0.000000e+00> : vector<4x256xf32>
    %101 = tpu.matmul %100, %99, %cst_79 {dimension_numbers = #tpu.dot_dimension_numbers<[1], [0], [0], [1], [0, 0, 1, 1], [], []>} : vector<4x16xf32>, vector<16x256xf32>, vector<4x256xf32> -> vector<4x256xf32>
    %c0_80 = arith.constant 0 : index
    %c0_81 = arith.constant 0 : index
    %102 = vector.load %arg9[%c0_80, %c0_81] : memref<4x1xf32, #tpu.memory_space<vmem>>, vector<4x1xf32>
    %103 = vector.broadcast %102 : vector<4x1xf32> to vector<4x256xf32>
    %104 = arith.addf %101, %103 : vector<4x256xf32>
    %c0_82 = arith.constant 0 : index
    %c0_83 = arith.constant 0 : index
    %c0_84 = arith.constant 0 : index
    %c0_85 = arith.constant 0 : index
    %105 = vector.load %arg18[%c0_82, %c0_83, %c0_84, %c0_85] : memref<2x1x4x256xf32, #tpu.memory_space<vmem>>, vector<1x1x4x256xf32>
    %106 = vector.shape_cast %105 : vector<1x1x4x256xf32> to vector<4x256xf32>
    %107 = vector.shape_cast %104 : vector<4x256xf32> to vector<1x1x4x256xf32>
    tpu.vector_store %arg18[%c0_82, %c0_83, %c0_84, %c0_85], %107 {strides = array<i32>} : memref<2x1x4x256xf32, #tpu.memory_space<vmem>>, vector<1x1x4x256xf32>,
    %cst_86 = arith.constant dense<0xFF800000> : vector<256xf32>
    %108 = vector.multi_reduction <maximumf>, %104, %cst_86 [0] : vector<4x256xf32> to vector<256xf32>
    %109 = vector.shape_cast %108 : vector<256xf32> to vector<1x256xf32>
    %110 = vector.broadcast %109 : vector<1x256xf32> to vector<4x256xf32>
    %111 = arith.subf %104, %110 : vector<4x256xf32>
    %112 = math.exp %111 : vector<4x256xf32>
    %cst_87 = arith.constant dense<0.000000e+00> : vector<256xf32>
    %113 = vector.multi_reduction <add>, %112, %cst_87 [0] : vector<4x256xf32> to vector<256xf32>
    %114 = vector.shape_cast %113 : vector<256xf32> to vector<1x256xf32>
    %115 = tpu.reciprocal %114 : vector<1x256xf32> -> vector<1x256xf32>
    %116 = vector.broadcast %115 : vector<1x256xf32> to vector<4x256xf32>
    %117 = arith.mulf %112, %116 : vector<4x256xf32>
    %c0_88 = arith.constant 0 : index
    %c0_89 = arith.constant 0 : index
    %118 = vector.load %arg10[%c0_88, %c0_89] : memref<16x4xf32, #tpu.memory_space<vmem>>, vector<16x4xf32>
    %cst_90 = arith.constant dense<0.000000e+00> : vector<16x256xf32>
    %119 = tpu.matmul %118, %117, %cst_90 {dimension_numbers = #tpu.dot_dimension_numbers<[1], [0], [0], [1], [0, 0, 1, 1], [], []>} : vector<16x4xf32>, vector<4x256xf32>, vector<16x256xf32> -> vector<16x256xf32>
    %c0_91 = arith.constant 0 : index
    %c0_92 = arith.constant 0 : index
    %120 = vector.load %arg11[%c0_91, %c0_92] : memref<16x1xf32, #tpu.memory_space<vmem>>, vector<16x1xf32>
    %121 = vector.broadcast %120 : vector<16x1xf32> to vector<16x256xf32>
    %122 = arith.addf %119, %121 : vector<16x256xf32>
    %cst_93 = arith.constant 0.000000e+00 : f32
    %123 = vector.shape_cast %2 : vector<1x256xi1> to vector<1x256xi1>
    %124 = vector.broadcast %123 : vector<1x256xi1> to vector<16x256xi1>
    %125 = vector.broadcast %cst_93 : f32 to vector<16x256xf32>
    %126 = arith.select %124, %122, %125 : vector<16x256xi1>, vector<16x256xf32>
    %c0_94 = arith.constant 0 : index
    %c0_95 = arith.constant 0 : index
    %c0_96 = arith.constant 0 : index
    %127 = vector.load %arg12[%c0_94, %c0_95, %c0_96] : memref<3x16x48xf32, #tpu.memory_space<vmem>>, vector<1x16x48xf32>
    %128 = vector.shape_cast %127 : vector<1x16x48xf32> to vector<16x48xf32>
    %cst_97 = arith.constant 0.000000e+00 : f32
    %129 = vector.broadcast %cst_97 : f32 to vector<16x1xf32>
    %130 = vector.extract_strided_slice %126 {offsets = [0, 0], sizes = [16, 255], strides = [1, 1]} : vector<16x256xf32> to vector<16x255xf32>
    %131 = tpu.concatenate %129, %130 in 1 : vector<16x1xf32>, vector<16x255xf32> -> vector<16x256xf32>
    %132 = vector.extract_strided_slice %126 {offsets = [0, 1], sizes = [16, 255], strides = [1, 1]} : vector<16x256xf32> to vector<16x255xf32>
    %133 = tpu.concatenate %132, %129 in 1 : vector<16x255xf32>, vector<16x1xf32> -> vector<16x256xf32>
    %c0_98 = arith.constant 0 : index
    %c0_99 = arith.constant 0 : index
    %134 = vector.load %arg19[%c0_98, %c0_99] : memref<48x256xf32, #tpu.memory_space<vmem>>, vector<16x256xf32>
    tpu.vector_store %arg19[%c0_98, %c0_99], %131 {strides = array<i32>} : memref<48x256xf32, #tpu.memory_space<vmem>>, vector<16x256xf32>,
    %c16_100 = arith.constant 16 : index
    %c0_101 = arith.constant 0 : index
    %135 = vector.load %arg19[%c16_100, %c0_101] : memref<48x256xf32, #tpu.memory_space<vmem>>, vector<16x256xf32>
    tpu.vector_store %arg19[%c16_100, %c0_101], %126 {strides = array<i32>} : memref<48x256xf32, #tpu.memory_space<vmem>>, vector<16x256xf32>,
    %c32_102 = arith.constant 32 : index
    %c0_103 = arith.constant 0 : index
    %136 = vector.load %arg19[%c32_102, %c0_103] : memref<48x256xf32, #tpu.memory_space<vmem>>, vector<16x256xf32>
    tpu.vector_store %arg19[%c32_102, %c0_103], %133 {strides = array<i32>} : memref<48x256xf32, #tpu.memory_space<vmem>>, vector<16x256xf32>,
    %c0_104 = arith.constant 0 : index
    %c0_105 = arith.constant 0 : index
    %137 = vector.load %arg19[%c0_104, %c0_105] : memref<48x256xf32, #tpu.memory_space<vmem>>, vector<48x256xf32>
    %cst_106 = arith.constant dense<0.000000e+00> : vector<16x256xf32>
    %138 = tpu.matmul %128, %137, %cst_106 {dimension_numbers = #tpu.dot_dimension_numbers<[1], [0], [0], [1], [0, 0, 1, 1], [], []>} : vector<16x48xf32>, vector<48x256xf32>, vector<16x256xf32> -> vector<16x256xf32>
    %c0_107 = arith.constant 0 : index
    %c0_108 = arith.constant 0 : index
    %c0_109 = arith.constant 0 : index
    %139 = vector.load %arg13[%c0_107, %c0_108, %c0_109] : memref<3x16x1xf32, #tpu.memory_space<vmem>>, vector<1x16x1xf32>
    %140 = vector.shape_cast %139 : vector<1x16x1xf32> to vector<16x1xf32>
    %141 = vector.broadcast %140 : vector<16x1xf32> to vector<16x256xf32>
    %142 = arith.addf %138, %141 : vector<16x256xf32>
    %cst_110 = arith.constant 0.000000e+00 : f32
    %143 = vector.broadcast %cst_110 : f32 to vector<16x256xf32>
    %144 = arith.maximumf %142, %143 : vector<16x256xf32>
    %c0_111 = arith.constant 0 : index
    %c0_112 = arith.constant 0 : index
    %c0_113 = arith.constant 0 : index
    %145 = vector.load %arg14[%c0_111, %c0_112, %c0_113] : memref<3x16x16xf32, #tpu.memory_space<vmem>>, vector<1x16x16xf32>
    %146 = vector.shape_cast %145 : vector<1x16x16xf32> to vector<16x16xf32>
    %cst_114 = arith.constant dense<0.000000e+00> : vector<16x256xf32>
    %147 = tpu.matmul %146, %144, %cst_114 {dimension_numbers = #tpu.dot_dimension_numbers<[1], [0], [0], [1], [0, 0, 1, 1], [], []>} : vector<16x16xf32>, vector<16x256xf32>, vector<16x256xf32> -> vector<16x256xf32>
    %c0_115 = arith.constant 0 : index
    %c0_116 = arith.constant 0 : index
    %c0_117 = arith.constant 0 : index
    %148 = vector.load %arg15[%c0_115, %c0_116, %c0_117] : memref<3x16x1xf32, #tpu.memory_space<vmem>>, vector<1x16x1xf32>
    %149 = vector.shape_cast %148 : vector<1x16x1xf32> to vector<16x1xf32>
    %150 = vector.broadcast %149 : vector<16x1xf32> to vector<16x256xf32>
    %151 = arith.addf %147, %150 : vector<16x256xf32>
    %152 = arith.addf %126, %151 : vector<16x256xf32>
    %cst_118 = arith.constant 0.000000e+00 : f32
    %153 = vector.shape_cast %2 : vector<1x256xi1> to vector<1x256xi1>
    %154 = vector.broadcast %153 : vector<1x256xi1> to vector<16x256xi1>
    %155 = vector.broadcast %cst_118 : f32 to vector<16x256xf32>
    %156 = arith.select %154, %152, %155 : vector<16x256xi1>, vector<16x256xf32>
    %c1_119 = arith.constant 1 : index
    %c0_120 = arith.constant 0 : index
    %c0_121 = arith.constant 0 : index
    %157 = vector.load %arg12[%c1_119, %c0_120, %c0_121] : memref<3x16x48xf32, #tpu.memory_space<vmem>>, vector<1x16x48xf32>
    %158 = vector.shape_cast %157 : vector<1x16x48xf32> to vector<16x48xf32>
    %cst_122 = arith.constant 0.000000e+00 : f32
    %159 = vector.broadcast %cst_122 : f32 to vector<16x2xf32>
    %160 = vector.extract_strided_slice %156 {offsets = [0, 0], sizes = [16, 254], strides = [1, 1]} : vector<16x256xf32> to vector<16x254xf32>
    %161 = tpu.concatenate %159, %160 in 1 : vector<16x2xf32>, vector<16x254xf32> -> vector<16x256xf32>
    %162 = vector.extract_strided_slice %156 {offsets = [0, 2], sizes = [16, 254], strides = [1, 1]} : vector<16x256xf32> to vector<16x254xf32>
    %163 = tpu.concatenate %162, %159 in 1 : vector<16x254xf32>, vector<16x2xf32> -> vector<16x256xf32>
    %c0_123 = arith.constant 0 : index
    %c0_124 = arith.constant 0 : index
    %164 = vector.load %arg19[%c0_123, %c0_124] : memref<48x256xf32, #tpu.memory_space<vmem>>, vector<16x256xf32>
    tpu.vector_store %arg19[%c0_123, %c0_124], %161 {strides = array<i32>} : memref<48x256xf32, #tpu.memory_space<vmem>>, vector<16x256xf32>,
    %c16_125 = arith.constant 16 : index
    %c0_126 = arith.constant 0 : index
    %165 = vector.load %arg19[%c16_125, %c0_126] : memref<48x256xf32, #tpu.memory_space<vmem>>, vector<16x256xf32>
    tpu.vector_store %arg19[%c16_125, %c0_126], %156 {strides = array<i32>} : memref<48x256xf32, #tpu.memory_space<vmem>>, vector<16x256xf32>,
    %c32_127 = arith.constant 32 : index
    %c0_128 = arith.constant 0 : index
    %166 = vector.load %arg19[%c32_127, %c0_128] : memref<48x256xf32, #tpu.memory_space<vmem>>, vector<16x256xf32>
    tpu.vector_store %arg19[%c32_127, %c0_128], %163 {strides = array<i32>} : memref<48x256xf32, #tpu.memory_space<vmem>>, vector<16x256xf32>,
    %c0_129 = arith.constant 0 : index
    %c0_130 = arith.constant 0 : index
    %167 = vector.load %arg19[%c0_129, %c0_130] : memref<48x256xf32, #tpu.memory_space<vmem>>, vector<48x256xf32>
    %cst_131 = arith.constant dense<0.000000e+00> : vector<16x256xf32>
    %168 = tpu.matmul %158, %167, %cst_131 {dimension_numbers = #tpu.dot_dimension_numbers<[1], [0], [0], [1], [0, 0, 1, 1], [], []>} : vector<16x48xf32>, vector<48x256xf32>, vector<16x256xf32> -> vector<16x256xf32>
    %c1_132 = arith.constant 1 : index
    %c0_133 = arith.constant 0 : index
    %c0_134 = arith.constant 0 : index
    %169 = vector.load %arg13[%c1_132, %c0_133, %c0_134] : memref<3x16x1xf32, #tpu.memory_space<vmem>>, vector<1x16x1xf32>
    %170 = vector.shape_cast %169 : vector<1x16x1xf32> to vector<16x1xf32>
    %171 = vector.broadcast %170 : vector<16x1xf32> to vector<16x256xf32>
    %172 = arith.addf %168, %171 : vector<16x256xf32>
    %cst_135 = arith.constant 0.000000e+00 : f32
    %173 = vector.broadcast %cst_135 : f32 to vector<16x256xf32>
    %174 = arith.maximumf %172, %173 : vector<16x256xf32>
    %c1_136 = arith.constant 1 : index
    %c0_137 = arith.constant 0 : index
    %c0_138 = arith.constant 0 : index
    %175 = vector.load %arg14[%c1_136, %c0_137, %c0_138] : memref<3x16x16xf32, #tpu.memory_space<vmem>>, vector<1x16x16xf32>
    %176 = vector.shape_cast %175 : vector<1x16x16xf32> to vector<16x16xf32>
    %cst_139 = arith.constant dense<0.000000e+00> : vector<16x256xf32>
    %177 = tpu.matmul %176, %174, %cst_139 {dimension_numbers = #tpu.dot_dimension_numbers<[1], [0], [0], [1], [0, 0, 1, 1], [], []>} : vector<16x16xf32>, vector<16x256xf32>, vector<16x256xf32> -> vector<16x256xf32>
    %c1_140 = arith.constant 1 : index
    %c0_141 = arith.constant 0 : index
    %c0_142 = arith.constant 0 : index
    %178 = vector.load %arg15[%c1_140, %c0_141, %c0_142] : memref<3x16x1xf32, #tpu.memory_space<vmem>>, vector<1x16x1xf32>
    %179 = vector.shape_cast %178 : vector<1x16x1xf32> to vector<16x1xf32>
    %180 = vector.broadcast %179 : vector<16x1xf32> to vector<16x256xf32>
    %181 = arith.addf %177, %180 : vector<16x256xf32>
    %182 = arith.addf %156, %181 : vector<16x256xf32>
    %cst_143 = arith.constant 0.000000e+00 : f32
    %183 = vector.shape_cast %2 : vector<1x256xi1> to vector<1x256xi1>
    %184 = vector.broadcast %183 : vector<1x256xi1> to vector<16x256xi1>
    %185 = vector.broadcast %cst_143 : f32 to vector<16x256xf32>
    %186 = arith.select %184, %182, %185 : vector<16x256xi1>, vector<16x256xf32>
    %c2_144 = arith.constant 2 : index
    %c0_145 = arith.constant 0 : index
    %c0_146 = arith.constant 0 : index
    %187 = vector.load %arg12[%c2_144, %c0_145, %c0_146] : memref<3x16x48xf32, #tpu.memory_space<vmem>>, vector<1x16x48xf32>
    %188 = vector.shape_cast %187 : vector<1x16x48xf32> to vector<16x48xf32>
    %cst_147 = arith.constant 0.000000e+00 : f32
    %189 = vector.broadcast %cst_147 : f32 to vector<16x4xf32>
    %190 = vector.extract_strided_slice %186 {offsets = [0, 0], sizes = [16, 252], strides = [1, 1]} : vector<16x256xf32> to vector<16x252xf32>
    %191 = tpu.concatenate %189, %190 in 1 : vector<16x4xf32>, vector<16x252xf32> -> vector<16x256xf32>
    %192 = vector.extract_strided_slice %186 {offsets = [0, 4], sizes = [16, 252], strides = [1, 1]} : vector<16x256xf32> to vector<16x252xf32>
    %193 = tpu.concatenate %192, %189 in 1 : vector<16x252xf32>, vector<16x4xf32> -> vector<16x256xf32>
    %c0_148 = arith.constant 0 : index
    %c0_149 = arith.constant 0 : index
    %194 = vector.load %arg19[%c0_148, %c0_149] : memref<48x256xf32, #tpu.memory_space<vmem>>, vector<16x256xf32>
    tpu.vector_store %arg19[%c0_148, %c0_149], %191 {strides = array<i32>} : memref<48x256xf32, #tpu.memory_space<vmem>>, vector<16x256xf32>,
    %c16_150 = arith.constant 16 : index
    %c0_151 = arith.constant 0 : index
    %195 = vector.load %arg19[%c16_150, %c0_151] : memref<48x256xf32, #tpu.memory_space<vmem>>, vector<16x256xf32>
    tpu.vector_store %arg19[%c16_150, %c0_151], %186 {strides = array<i32>} : memref<48x256xf32, #tpu.memory_space<vmem>>, vector<16x256xf32>,
    %c32_152 = arith.constant 32 : index
    %c0_153 = arith.constant 0 : index
    %196 = vector.load %arg19[%c32_152, %c0_153] : memref<48x256xf32, #tpu.memory_space<vmem>>, vector<16x256xf32>
    tpu.vector_store %arg19[%c32_152, %c0_153], %193 {strides = array<i32>} : memref<48x256xf32, #tpu.memory_space<vmem>>, vector<16x256xf32>,
    %c0_154 = arith.constant 0 : index
    %c0_155 = arith.constant 0 : index
    %197 = vector.load %arg19[%c0_154, %c0_155] : memref<48x256xf32, #tpu.memory_space<vmem>>, vector<48x256xf32>
    %cst_156 = arith.constant dense<0.000000e+00> : vector<16x256xf32>
    %198 = tpu.matmul %188, %197, %cst_156 {dimension_numbers = #tpu.dot_dimension_numbers<[1], [0], [0], [1], [0, 0, 1, 1], [], []>} : vector<16x48xf32>, vector<48x256xf32>, vector<16x256xf32> -> vector<16x256xf32>
    %c2_157 = arith.constant 2 : index
    %c0_158 = arith.constant 0 : index
    %c0_159 = arith.constant 0 : index
    %199 = vector.load %arg13[%c2_157, %c0_158, %c0_159] : memref<3x16x1xf32, #tpu.memory_space<vmem>>, vector<1x16x1xf32>
    %200 = vector.shape_cast %199 : vector<1x16x1xf32> to vector<16x1xf32>
    %201 = vector.broadcast %200 : vector<16x1xf32> to vector<16x256xf32>
    %202 = arith.addf %198, %201 : vector<16x256xf32>
    %cst_160 = arith.constant 0.000000e+00 : f32
    %203 = vector.broadcast %cst_160 : f32 to vector<16x256xf32>
    %204 = arith.maximumf %202, %203 : vector<16x256xf32>
    %c2_161 = arith.constant 2 : index
    %c0_162 = arith.constant 0 : index
    %c0_163 = arith.constant 0 : index
    %205 = vector.load %arg14[%c2_161, %c0_162, %c0_163] : memref<3x16x16xf32, #tpu.memory_space<vmem>>, vector<1x16x16xf32>
    %206 = vector.shape_cast %205 : vector<1x16x16xf32> to vector<16x16xf32>
    %cst_164 = arith.constant dense<0.000000e+00> : vector<16x256xf32>
    %207 = tpu.matmul %206, %204, %cst_164 {dimension_numbers = #tpu.dot_dimension_numbers<[1], [0], [0], [1], [0, 0, 1, 1], [], []>} : vector<16x16xf32>, vector<16x256xf32>, vector<16x256xf32> -> vector<16x256xf32>
    %c2_165 = arith.constant 2 : index
    %c0_166 = arith.constant 0 : index
    %c0_167 = arith.constant 0 : index
    %208 = vector.load %arg15[%c2_165, %c0_166, %c0_167] : memref<3x16x1xf32, #tpu.memory_space<vmem>>, vector<1x16x1xf32>
    %209 = vector.shape_cast %208 : vector<1x16x1xf32> to vector<16x1xf32>
    %210 = vector.broadcast %209 : vector<16x1xf32> to vector<16x256xf32>
    %211 = arith.addf %207, %210 : vector<16x256xf32>
    %212 = arith.addf %186, %211 : vector<16x256xf32>
    %c0_168 = arith.constant 0 : index
    %c0_169 = arith.constant 0 : index
    %213 = vector.load %arg16[%c0_168, %c0_169] : memref<4x16xf32, #tpu.memory_space<vmem>>, vector<4x16xf32>
    %cst_170 = arith.constant dense<0.000000e+00> : vector<4x256xf32>
    %214 = tpu.matmul %213, %212, %cst_170 {dimension_numbers = #tpu.dot_dimension_numbers<[1], [0], [0], [1], [0, 0, 1, 1], [], []>} : vector<4x16xf32>, vector<16x256xf32>, vector<4x256xf32> -> vector<4x256xf32>
    %c0_171 = arith.constant 0 : index
    %c0_172 = arith.constant 0 : index
    %215 = vector.load %arg17[%c0_171, %c0_172] : memref<4x1xf32, #tpu.memory_space<vmem>>, vector<4x1xf32>
    %216 = vector.broadcast %215 : vector<4x1xf32> to vector<4x256xf32>
    %217 = arith.addf %214, %216 : vector<4x256xf32>
    %c1_173 = arith.constant 1 : index
    %c0_174 = arith.constant 0 : index
    %c0_175 = arith.constant 0 : index
    %c0_176 = arith.constant 0 : index
    %218 = vector.load %arg18[%c1_173, %c0_174, %c0_175, %c0_176] : memref<2x1x4x256xf32, #tpu.memory_space<vmem>>, vector<1x1x4x256xf32>
    %219 = vector.shape_cast %218 : vector<1x1x4x256xf32> to vector<4x256xf32>
    %220 = vector.shape_cast %217 : vector<4x256xf32> to vector<1x1x4x256xf32>
    tpu.vector_store %arg18[%c1_173, %c0_174, %c0_175, %c0_176], %220 {strides = array<i32>} : memref<2x1x4x256xf32, #tpu.memory_space<vmem>>, vector<1x1x4x256xf32>,
    return
  }
  func.func @transform_0(%arg0: i32) -> (i32, i32, i32) {
    %c0_i32 = arith.constant 0 : i32
    %c0_i32_0 = arith.constant 0 : i32
    %c0_i32_1 = arith.constant 0 : i32
    return %arg0, %c0_i32, %c0_i32_0 : i32, i32, i32
  }
  func.func @transform_1(%arg0: i32) -> (i32, i32) {
    %c0_i32 = arith.constant 0 : i32
    %c0_i32_0 = arith.constant 0 : i32
    %c0_i32_1 = arith.constant 0 : i32
    return %c0_i32, %c0_i32_0 : i32, i32
  }
  func.func @transform_2(%arg0: i32) -> (i32, i32) {
    %c0_i32 = arith.constant 0 : i32
    %c0_i32_0 = arith.constant 0 : i32
    %c0_i32_1 = arith.constant 0 : i32
    return %c0_i32, %c0_i32_0 : i32, i32
  }
  func.func @transform_3(%arg0: i32) -> (i32, i32, i32) {
    %c0_i32 = arith.constant 0 : i32
    %c0_i32_0 = arith.constant 0 : i32
    %c0_i32_1 = arith.constant 0 : i32
    %c0_i32_2 = arith.constant 0 : i32
    return %c0_i32, %c0_i32_0, %c0_i32_1 : i32, i32, i32
  }
  func.func @transform_4(%arg0: i32) -> (i32, i32, i32) {
    %c0_i32 = arith.constant 0 : i32
    %c0_i32_0 = arith.constant 0 : i32
    %c0_i32_1 = arith.constant 0 : i32
    %c0_i32_2 = arith.constant 0 : i32
    return %c0_i32, %c0_i32_0, %c0_i32_1 : i32, i32, i32
  }
  func.func @transform_5(%arg0: i32) -> (i32, i32, i32) {
    %c0_i32 = arith.constant 0 : i32
    %c0_i32_0 = arith.constant 0 : i32
    %c0_i32_1 = arith.constant 0 : i32
    %c0_i32_2 = arith.constant 0 : i32
    return %c0_i32, %c0_i32_0, %c0_i32_1 : i32, i32, i32
  }
  func.func @transform_6(%arg0: i32) -> (i32, i32, i32) {
    %c0_i32 = arith.constant 0 : i32
    %c0_i32_0 = arith.constant 0 : i32
    %c0_i32_1 = arith.constant 0 : i32
    %c0_i32_2 = arith.constant 0 : i32
    return %c0_i32, %c0_i32_0, %c0_i32_1 : i32, i32, i32
  }
  func.func @transform_7(%arg0: i32) -> (i32, i32) {
    %c0_i32 = arith.constant 0 : i32
    %c0_i32_0 = arith.constant 0 : i32
    %c0_i32_1 = arith.constant 0 : i32
    return %c0_i32, %c0_i32_0 : i32, i32
  }
  func.func @transform_8(%arg0: i32) -> (i32, i32) {
    %c0_i32 = arith.constant 0 : i32
    %c0_i32_0 = arith.constant 0 : i32
    %c0_i32_1 = arith.constant 0 : i32
    return %c0_i32, %c0_i32_0 : i32, i32
  }
  func.func @transform_9(%arg0: i32) -> (i32, i32) {
    %c0_i32 = arith.constant 0 : i32
    %c0_i32_0 = arith.constant 0 : i32
    %c0_i32_1 = arith.constant 0 : i32
    return %c0_i32, %c0_i32_0 : i32, i32
  }
  func.func @transform_10(%arg0: i32) -> (i32, i32) {
    %c0_i32 = arith.constant 0 : i32
    %c0_i32_0 = arith.constant 0 : i32
    %c0_i32_1 = arith.constant 0 : i32
    return %c0_i32, %c0_i32_0 : i32, i32
  }
  func.func @transform_11(%arg0: i32) -> (i32, i32, i32) {
    %c0_i32 = arith.constant 0 : i32
    %c0_i32_0 = arith.constant 0 : i32
    %c0_i32_1 = arith.constant 0 : i32
    %c0_i32_2 = arith.constant 0 : i32
    return %c0_i32, %c0_i32_0, %c0_i32_1 : i32, i32, i32
  }
  func.func @transform_12(%arg0: i32) -> (i32, i32, i32) {
    %c0_i32 = arith.constant 0 : i32
    %c0_i32_0 = arith.constant 0 : i32
    %c0_i32_1 = arith.constant 0 : i32
    %c0_i32_2 = arith.constant 0 : i32
    return %c0_i32, %c0_i32_0, %c0_i32_1 : i32, i32, i32
  }
  func.func @transform_13(%arg0: i32) -> (i32, i32, i32) {
    %c0_i32 = arith.constant 0 : i32
    %c0_i32_0 = arith.constant 0 : i32
    %c0_i32_1 = arith.constant 0 : i32
    %c0_i32_2 = arith.constant 0 : i32
    return %c0_i32, %c0_i32_0, %c0_i32_1 : i32, i32, i32
  }
  func.func @transform_14(%arg0: i32) -> (i32, i32, i32) {
    %c0_i32 = arith.constant 0 : i32
    %c0_i32_0 = arith.constant 0 : i32
    %c0_i32_1 = arith.constant 0 : i32
    %c0_i32_2 = arith.constant 0 : i32
    return %c0_i32, %c0_i32_0, %c0_i32_1 : i32, i32, i32
  }
  func.func @transform_15(%arg0: i32) -> (i32, i32) {
    %c0_i32 = arith.constant 0 : i32
    %c0_i32_0 = arith.constant 0 : i32
    %c0_i32_1 = arith.constant 0 : i32
    return %c0_i32, %c0_i32_0 : i32, i32
  }
  func.func @transform_16(%arg0: i32) -> (i32, i32) {
    %c0_i32 = arith.constant 0 : i32
    %c0_i32_0 = arith.constant 0 : i32
    %c0_i32_1 = arith.constant 0 : i32
    return %c0_i32, %c0_i32_0 : i32, i32
  }
  func.func @transform_17(%arg0: i32) -> (i32, i32, i32, i32) {
    %c0_i32 = arith.constant 0 : i32
    %c0_i32_0 = arith.constant 0 : i32
    %c0_i32_1 = arith.constant 0 : i32
    %c0_i32_2 = arith.constant 0 : i32
    return %c0_i32, %arg0, %c0_i32_0, %c0_i32_1 : i32, i32, i32, i32
  }
}

</mosaic_0001>

<bundles_post_ra>
// kernel: tpu_custom_call.1
= control target key start
LH: loop header
LB: loop body
LE: loop exit
PB: predicated region body
PF: predicated region fallthrough
CT: control target
= control target key end

     0   :  { %6 = vsyncpa [#allocation3], 0  ;;  %s106_s0 = inlined_call_operand.hbm [shape: f32[8,128], index: 0, kind: input, shape index: {}]   ;;  %s107_s1 = inlined_call_operand.hbm [shape: f32[8,128], index: 1, kind: output, shape index: {}]  }
   0x1   :  { %7 = vsyncpa [#allocation4], 0  ;;  %s87_s6 = smov [#allocation2]  }
   0x2   :  { %s14_s7 = sshll.u32 %s87_s6, 4  ;;  %s15_s7 = int_to_ptr.vmem [resolvable:$true] %s14_s7 }
   0x3   :  { %s51_s8 = scalar_lea.vmem %s15_s7, 128  ;;  %p56_p1 = scmp.lt.s32.totalorder %s15_s7, %s15_s7 }
   0x4   :  { %p52_p0 = scmp.ne.s32.totalorder %s15_s7, %s51_s8  ;;  %p57_p2 = scmp.lt.s32.totalorder %s51_s8, %s51_s8 }
   0x6   :  { %p58_p3 = por %p57_p2, %p56_p1 }
   0x8   :  { %p59_p4 = pnand %p58_p3, %p52_p0 }
   0xa   :  { %62 = shalt.err (!%p59_p4)
}
   0xb   :  { %17 = dma.hbm_to_vmem [thread:$0]  %s106_s0, 128, %s15_s7, [#allocation3]  }
   0xc   :  { %83 = dma.done.wait [#allocation3], 128  }
   0xd   :  { %84 = vsyncadd [#allocation3], 4294967168  ;;  %v21_v0 = vld [vmem:[#allocation2] sm:$0xff]  ;;  %s88_s11 = smov 1   ;;  %s89_s12 = smov [#allocation5]  }
   0xe   :  { %22 = vrot.lane.b32.xlu0 %v21_v0, %s88_s11  ;;  %s31_s13 = sshll.u32 %s89_s12, 4  ;;  %s32_s13 = int_to_ptr.vmem [resolvable:$true] %s31_s13 }
   0xf   :  { %s63_s14 = scalar_lea.vmem %s32_s13, 128  ;;  %p68_p6 = scmp.lt.s32.totalorder %s32_s13, %s32_s13 }
  0x10   :  { %p64_p5 = scmp.ne.s32.totalorder %s32_s13, %s63_s14  ;;  %p69_p7 = scmp.lt.s32.totalorder %s63_s14, %s63_s14 }
  0x12   :  { %p70_p8 = por %p69_p7, %p68_p6 }
  0x14   :  { %p71_p9 = pnand %p70_p8, %p64_p5 }
  0x80   :  { %v23_v1 = vpop.permute.xlu0 %22 }
  0x81   :  { %24 = vst [vmem:[#allocation5] sm:$0xff] %v23_v1 }
  0x82   :  { %74 = shalt.err (!%p71_p9)
}
  0x83   :  { %34 = dma.vmem_to_hbm [thread:$0]  %s32_s13, 128, %s107_s1, [#allocation4]  }
  0x84   :  { %85 = dma.done.wait [#allocation4], 128  }
  0x85   :  { %86 = vsyncadd [#allocation4], 4294967168 }
  0x86   :  { %38 = vsyncpa [#allocation3], 1 }
  0x87   :  { %39 = vsyncpa [#allocation4], 1 }

// kernel: tpu_custom_call.1
= control target key start
LH: loop header
LB: loop body
LE: loop exit
PB: predicated region body
PF: predicated region fallthrough
CT: control target
= control target key end

     0   :  { %7 = vsyncpa [#allocation3], 0  ;;  %s651_s0 = inlined_call_operand.hbm [shape: f32[8,128], index: 0, kind: input, shape index: {}]   ;;  %s652_s1 = inlined_call_operand.hbm [shape: f32[2,8,128], index: 1, kind: input, shape index: {}]   ;;  %s653_s2 = inlined_call_operand.hbm [shape: f32[2,8,128], index: 2, kind: output, shape index: {}]  }
   0x1   :  { %8 = vsyncpa [#allocation6], 0 }
   0x2   :  { %10 = vsyncpa [#allocation6 + $0x1], 0 }
   0x3   :  { %11 = vsyncpa [#allocation4], 0 }
   0x4   :  { %13 = vsyncpa [#allocation4 + $0x1], 0  ;;  %s485_s9 = smov 0   ;;  %s487_s10 = smov 0  }
   0x5   :  { %s489_s11 = smov 0   ;;  %s491_s12 = smov 0  }
   0x6 LB: > { %s506_s13 = sadd.s32 4294967295, %s465_s12   ;;  %s272_s14 = sadd.s32 4294967294, %s465_s12   ;;  %s465_s12 = sphi %s491_s12, %s676_s12   ;;  %s461_s11 = sphi %s489_s11, %s675_s11   ;;  %s457_s10 = sphi %s487_s10, %s674_s10   ;;  %s453_s9 = sphi %s485_s9, %s673_s9  }
   0x7   : > { %p60_p0 = scmp.ne.s32.totalorder %s457_s10, %s453_s9  ;;  %p654_p1 = scmp.eq.s32.totalorder %s506_s13, 0 }
   0x8   : > { %p90_p3 = scmp.eq.s32.totalorder %s272_s14, 1  ;;  %p273_p5 = scmp.ge.s32.totalorder %s465_s12, 1 }
   0x9   : > { %p515_p4 = por %p654_p1, %p60_p0  ;;  %p97_p7 = scmp.lt.s32.totalorder %s465_s12, 3 }
   0xa   : > { %p520_p6 = por %p90_p3, %p60_p0  ;;  %s467_s18 = smov [#allocation2]  }
   0xb   : > { %s658_s15 = scalar_select %p515_p4, 1, 0 }
   0xc   : > { %s659_s16 = scalar_select %p520_p6, 1, 0 }
   0xd   : > { %p525_p8 = pnand %p273_p5, %p97_p7  ;;  %s110_s19 = sshll.u32 %s467_s18, 4  ;;  %s111_s19 = int_to_ptr.vmem [resolvable:$true] %s110_s19 }
   0xe   : > { %s533_s20 = sadd.s32 1, %s465_s12   ;;  %s47_s24 = sadd.s32 1, %s461_s11 }
   0xf   : > { %s660_s17 = scalar_select %p525_p8, 1, 0 }
  0x10   : > { %p294_p10 = pneg %p525_p8  ;;  %s44_s22 = ssub.s32 %s465_s12, %s533_s20 }
  0x11   : > { %p543_p12 = scmp.eq.s32.totalorder %s44_s22, 0  ;;  %p54_p13 = scmp.ne.s32.totalorder %s461_s11, %s457_s10 }
  0x12   : > { %p537_p11 = pnand %p294_p10, %p654_p1  ;;  %s354_s25 = scalar_lea.vmem %s111_s19, 128 }
  0x13   : > { %p355_p3 = scmp.ne.s32.totalorder %s111_s19, %s354_s25  ;;  %p362_p9 = scmp.lt.s32.totalorder %s111_s19, %s111_s19 }
  0x14   : > { %p345_p0 = pneg %p537_p11  ;;  %p363_p2 = scmp.lt.s32.totalorder %s354_s25, %s354_s25 }
  0x16   : > { %p357_p5 = pnand %p355_p3, %p345_p0  ;;  %p364_p10 = por %p363_p2, %p362_p9 }
  0x18   : > { %p358_p7 = pneg %p357_p5 }
  0x1a   : > { %p365_p1 = pnand %p364_p10, %p358_p7 }
  0x1c   : > { %368 = shalt.err (!%p365_p1)
}
  0x1d   : > { %297 = dma.hbm_to_vmem [thread:$0]  (!%p537_p11), %s651_s0, 128, %s111_s19, [#allocation3]  }
  0x1e   : > { %s560_s28 = scalar_select %p543_p12, %s461_s11, %s47_s24  }
  0x1f   : > { %p55_p1 = scmp.eq.s32.totalorder %s465_s12, 0  ;;  %p663_p2 = scmp.eq.s32.totalorder %s506_s13, 1 }
  0x20   : > { %p307_p0 = scmp.lt.s32.totalorder %s465_s12, 2  ;;  %s121_s30 = sand.u32 1, %s461_s11  }
  0x21   : > { %p568_p9 = por %p663_p2, %p54_p13  ;;  %p56_p3 = por %p55_p1, %p54_p13 }
  0x22   : > { %s276_s3 = sshll.u32 %s121_s30, 3  ;;  %s277_s4 = sshll.u32 %s465_s12, 7 }
  0x23   : > { %s664_s29 = scalar_select %p568_p9, 1, 0 }
  0x24   : > { %s581_s7 = scalar_lea.hbm %s652_s1, %s277_s4  ;;  %s125_s8 = scalar_lea.vmem [#allocation5], %s276_s3 }
  0x25   : > { %s132_s14 = sshll.u32 %s125_s8, 4  ;;  %p583_p11 = pnand %p307_p0, %p56_p3  ;;  %s133_s14 = int_to_ptr.vmem [resolvable:$true] %s132_s14 }
  0x26   : > { %s122_s19 = scalar_lea.sflag [#allocation6], %s121_s30  ;;  %s369_s21 = scalar_lea.hbm %s581_s7, 128 }
  0x27   : > { %p370_p12 = scmp.ne.s32.totalorder %s581_s7, %s369_s21  ;;  %p371_p13 = pneg %p583_p11 }
  0x28   : > { %s374_s24 = scalar_lea.hbm %s652_s1, 256  ;;  %p375_p10 = scmp.lt.s32.totalorder %s581_s7, %s652_s1 }
  0x29   : > { %p372_p5 = pnand %p371_p13, %p370_p12  ;;  %p376_p1 = scmp.lt.s32.totalorder %s374_s24, %s369_s21 }
  0x2b   : > { %p373_p7 = pneg %p372_p5  ;;  %p377_p2 = por %p376_p1, %p375_p10 }
  0x2d   : > { %p378_p0 = pnand %p377_p2, %p373_p7 }
  0x2f   : > { %381 = shalt.err (!%p378_p0)
}
  0x30   : > { %s382_s27 = scalar_lea.vmem %s133_s14, 128  ;;  %s468_s30 = smov [#allocation5]  }
  0x31   : > { %p383_p3 = scmp.ne.s32.totalorder %s133_s14, %s382_s27  ;;  %s387_s3 = sshll.u32 %s468_s30, 4  ;;  %s388_s3 = int_to_ptr.vmem [resolvable:$false] %s387_s3 }
  0x32   : > { %s389_s4 = scalar_lea.vmem %s388_s3, 256  ;;  %p390_p12 = scmp.lt.s32.totalorder %s133_s14, %s388_s3 }
  0x33   : > { %p385_p6 = pnand %p383_p3, %p371_p13  ;;  %p391_p5 = scmp.lt.s32.totalorder %s389_s4, %s382_s27 }
  0x35   : > { %p386_p9 = pneg %p385_p6  ;;  %p392_p4 = por %p391_p5, %p390_p12 }
  0x37   : > { %p393_p8 = pnand %p392_p4, %p386_p9 }
  0x39   : > { %396 = shalt.err (!%p393_p8)
}
  0x3a   : > { %301 = dma.hbm_to_vmem [thread:$0]  (!%p583_p11), %s581_s7, 128, %s133_s14, %s122_s19  }
  0x3b   : > { %p666_p7 = scmp.ne.s32.totalorder %s660_s17, 0 }
  0x3c   : > { %p667_p10 = scmp.eq.s32.totalorder (!%p666_p7), %s506_s13, 0 }
  0x3d   : > { %141 = sbr.rel (%p666_p7) target bundleno = 96 (0x60), region = 28 }
  0x42   : > { %440 = dma.done.wait (%p667_p10), [#allocation3], 128   ;;  %p668_p6 = pmov %p667_p10 }
  0x43   : > { %s608_s5 = sand.u32 1, %s457_s10   ;;  %p669_p4 = scmp.ne.s32.totalorder %s658_s15, 0 }
  0x44   : > { %442 = vsyncadd (%p668_p6), [#allocation3], 4294967168  ;;  %s280_s6 = sshll.u32 %s608_s5, 3  ;;  %s148_s8 = scalar_lea.sflag [#allocation6], %s608_s5 }
  0x45   : > { %s151_s18 = scalar_lea.vmem [#allocation5], %s280_s6 }
  0x46   : > { %444 = dma.done.wait (%p669_p4), %s148_s8, 128  }
  0x47   : > { %446 = vsyncadd (%p669_p4), %s148_s8, 4294967168  ;;  %s171_s17 = scalar_lea.vmem [#allocation7], %s280_s6  ;;  %s283_s14 = sshll.u32 %s506_s13, 7  ;;  %v172_v0 = vld [vmem:[%s151_s18] sm:$0xff]  ;;  %v173_v1 = vld [vmem:[#allocation2] sm:$0xff] }
  0x48   : > { %s190_s7 = sshll.u32 %s171_s17, 4  ;;  %v174_v2 = vadd.f32 %v173_v1, %v172_v0  ;;  %s188_s22 = scalar_lea.hbm %s653_s2, %s283_s14  ;;  %s191_s7 = int_to_ptr.vmem [resolvable:$true] %s190_s7 }
  0x49   : > { %s177_s23 = scalar_lea.sflag [#allocation4], %s608_s5  ;;  %s397_s24 = scalar_lea.vmem %s191_s7, 128 }
  0x4a   : > { %175 = vst [vmem:[%s171_s17] sm:$0xff] %v174_v2  ;;  %p398_p8 = scmp.ne.s32.totalorder %s191_s7, %s397_s24  ;;  %p670_p9 = scmp.ne.s32.totalorder %s664_s29, 0 }
  0x4b   : > { %s469_s15 = smov [#allocation7]  }
  0x4c   : > { %p399_p11 = pnand %p398_p8, %p670_p9  ;;  %s401_s25 = sshll.u32 %s469_s15, 4  ;;  %s402_s25 = int_to_ptr.vmem [resolvable:$false] %s401_s25 }
  0x4d   : > { %s403_s26 = scalar_lea.vmem %s402_s25, 256  ;;  %p404_p1 = scmp.lt.s32.totalorder %s191_s7, %s402_s25 }
  0x4e   : > { %p400_p13 = pneg %p399_p11  ;;  %p405_p2 = scmp.lt.s32.totalorder %s403_s26, %s397_s24 }
  0x50   : > { %p406_p0 = por %p405_p2, %p404_p1 }
  0x52   : > { %p407_p3 = pnand %p406_p0, %p400_p13 }
  0x54   : > { %410 = shalt.err (!%p407_p3)
}
  0x55   : > { %s411_s13 = scalar_lea.hbm %s188_s22, 128  ;;  %s415_s3 = scalar_lea.hbm %s653_s2, 256 }
  0x56   : > { %p412_p12 = scmp.ne.s32.totalorder %s188_s22, %s411_s13  ;;  %p416_p10 = scmp.lt.s32.totalorder %s188_s22, %s653_s2 }
  0x57   : > { %p417_p6 = scmp.lt.s32.totalorder %s415_s3, %s411_s13 }
  0x58   : > { %p413_p5 = pnand %p412_p12, %p670_p9 }
  0x59   : > { %p418_p4 = por %p417_p6, %p416_p10 }
  0x5a   : > { %p414_p7 = pneg %p413_p5 }
  0x5c   : > { %p419_p8 = pnand %p418_p4, %p414_p7 }
  0x5e   : > { %422 = shalt.err (!%p419_p8)
}
  0x5f   : > { %292 = dma.vmem_to_hbm [thread:$0]  (%p670_p9), %s191_s7, 128, %s188_s22, %s177_s23  }
  0x60 PF: > { %s202_s6 = sand.u32 1, %s453_s9   ;;  %p671_p11 = scmp.ne.s32.totalorder %s659_s16, 0 }
  0x61   : > { %p672_p13 = scmp.ge.s32.totalorder %s465_s12, 2  ;;  %s203_s8 = scalar_lea.sflag [#allocation4], %s202_s6 }
  0x63   : > { %p303_p1 = pnand %p672_p13, %p671_p11 }
  0x65   : > { %p304_p2 = pneg %p303_p1 }
  0x67   : > { %448 = dma.done.wait (%p304_p2), %s203_s8, 128  }
  0x68   : > { %450 = vsyncadd (%p304_p2), %s203_s8, 4294967168  ;;  %p16_p0 = scmp.ge.s32.totalorder %s533_s20, 4   ;;  %s673_s9 = smov %s457_s10 }
  0x69   : > { %s674_s10 = smov %s461_s11  ;;  %s675_s11 = smov %s560_s28 }
  0x6a   : > { %s676_s12 = smov %s533_s20  ;;  %18 = sbr.rel (!%p16_p0) target bundleno = 6 (0x6), region = 78 }
  0x6f   :  { %208 = vsyncpa [#allocation3], 1 }
  0x70   :  { %210 = vsyncpa [#allocation3 + $0x1], 1 }
  0x71   :  { %211 = vsyncpa [#allocation6], 1 }
  0x72   :  { %213 = vsyncpa [#allocation6 + $0x1], 1 }
  0x73   :  { %214 = vsyncpa [#allocation4], 1 }
  0x74   :  { %216 = vsyncpa [#allocation4 + $0x1], 1 }

// kernel: tpu_custom_call.1
= control target key start
LH: loop header
LB: loop body
LE: loop exit
PB: predicated region body
PF: predicated region fallthrough
CT: control target
= control target key end

     0   :  { %s3690_s0 = inlined_call_operand.vmem [shape: f32[2,4,256], index: 0, kind: input, shape index: {}]   ;;  %s3691_s1 = inlined_call_operand.vmem [shape: f32[16,4], index: 1, kind: input, shape index: {}]   ;;  %s3692_s2 = inlined_call_operand.vmem [shape: f32[16,1], index: 2, kind: input, shape index: {}]   ;;  %s3693_s3 = inlined_call_operand.vmem [shape: f32[3,16,48], index: 3, kind: input, shape index: {}]   ;;  %s3694_s4 = inlined_call_operand.vmem [shape: f32[3,16,1], index: 4, kind: input, shape index: {}]   ;;  %s3695_s5 = inlined_call_operand.vmem [shape: f32[3,16,16], index: 5, kind: input, shape index: {}]   ;;  %s3696_s6 = inlined_call_operand.vmem [shape: f32[3,16,1], index: 6, kind: input, shape index: {}]   ;;  %s3697_s7 = inlined_call_operand.vmem [shape: f32[4,16], index: 7, kind: input, shape index: {}]   ;;  %s3698_s8 = inlined_call_operand.vmem [shape: f32[4,1], index: 8, kind: input, shape index: {}]   ;;  %s3699_s9 = inlined_call_operand.vmem [shape: f32[16,4], index: 9, kind: input, shape index: {}]   ;;  %s3700_s10 = inlined_call_operand.vmem [shape: f32[16,1], index: 10, kind: input, shape index: {}]   ;;  %s3701_s11 = inlined_call_operand.vmem [shape: f32[3,16,48], index: 11, kind: input, shape index: {}]   ;;  %s3702_s12 = inlined_call_operand.vmem [shape: f32[3,16,1], index: 12, kind: input, shape index: {}]   ;;  %s3703_s13 = inlined_call_operand.vmem [shape: f32[3,16,16], index: 13, kind: input, shape index: {}]   ;;  %s3704_s14 = inlined_call_operand.vmem [shape: f32[3,16,1], index: 14, kind: input, shape index: {}]   ;;  %s3705_s15 = inlined_call_operand.vmem [shape: f32[4,16], index: 15, kind: input, shape index: {}]   ;;  %s3706_s16 = inlined_call_operand.vmem [shape: f32[4,1], index: 16, kind: input, shape index: {}]   ;;  %s3707_s17 = inlined_call_operand.hbm [shape: f32[2,2,4,256], index: 17, kind: output, shape index: {}]  }
   0x1   :  { %3725 = sst [smem:[#allocation11_spill]] %s3690_s0 }
   0x2   :  { %3726 = sst [smem:[#allocation12_spill]] %s3691_s1 }
   0x3   :  { %3727 = sst [smem:[#allocation13_spill]] %s3692_s2 }
   0x4   :  { %3728 = sst [smem:[#allocation14_spill]] %s3707_s17 }
   0x5   :  { %22 = vsyncpa [#allocation4], 0 }
   0x6   :  { %24 = vsyncpa [#allocation4 + $0x1], 0  ;;  %s3025_s24 = smov 0   ;;  %s3027_s25 = smov 0  }
   0x7   :  { %s3029_s26 = smov 0   ;;  %s3031_s27 = smov 0  }
   0x8 LB: > { %3729 = sst [smem:[#allocation6_spill]] %s2909_s24  ;;  %s3046_s28 = sadd.s32 4294967295, %s2921_s27   ;;  %s2921_s27 = sphi %s3031_s27, %s3754_s27   ;;  %s2917_s26 = sphi %s3029_s26, %s3756_s26   ;;  %s2913_s25 = sphi %s3027_s25, %s3758_s25   ;;  %s2909_s24 = sphi %s3025_s24, %s3757_s24  }
   0x9   : > { %3730 = sst [smem:[#allocation7_spill]] %s2917_s26  ;;  %s2671_s29 = sadd.s32 4294967294, %s2921_s27  }
   0xa   : > { %s3050_s0 = sadd.s32 1, %s2921_s27   ;;  %s399_s30 = sadd.s32 1, %s2917_s26 }
   0xb   : > { %3731 = sst [smem:[#allocation8_spill]] %s3050_s0  ;;  %s396_s18 = ssub.s32 %s2921_s27, %s3050_s0 }
   0xc   : > { %p409_p0 = scmp.ne.s32.totalorder %s2917_s26, %s2913_s25  ;;  %p397_p1 = scmp.eq.s32.totalorder %s396_s18, 0 }
   0xd   : > { %p410_p2 = scmp.eq.s32.totalorder %s3046_s28, 1  ;;  %p415_p3 = scmp.ne.s32.totalorder %s2913_s25, %s2909_s24 }
   0xe   : > { %p416_p4 = scmp.eq.s32.totalorder %s2671_s29, 1  ;;  %p2674_p7 = scmp.ge.s32.totalorder %s2921_s27, 1 }
   0xf   : > { %s3061_s19 = scalar_select %p397_p1, %s2917_s26, %s399_s30  }
  0x10   : > { %p3063_p5 = por %p410_p2, %p409_p0  ;;  %p3067_p6 = por %p416_p4, %p415_p3 }
  0x11   : > { %3732 = sst [smem:[#allocation9_spill]] %s3061_s19  ;;  %p490_p8 = scmp.lt.s32.totalorder %s2921_s27, 3 }
  0x12   : > { %s3734_s20 = scalar_select %p3067_p6, 1, 0 }
  0x13   : > { %p491_p9 = pnand %p2674_p7, %p490_p8 }
  0x14   : > { %3735 = sst [smem:[#allocation10_spill]] %s3734_s20  ;;  %p542_p10 = scmp.lt.s32.totalorder (!%p491_p9), %s3046_s28, 1 }
  0x15   : > { %494 = sbr.rel (%p491_p9) target bundleno = 4165 (0x1045), region = 88  ;;  %s3736_s2 = sld [smem:[#allocation13_spill]] (!%p491_p9) }
  0x16   : > { %s3737_s0 = sld [smem:[#allocation11_spill]] (!%p491_p9)  ;;  %s3719_s26 = smov (!%p491_p9), 2  }
  0x17   : > { %s3738_s24 = sld [smem:[#allocation12_spill]] (!%p491_p9)  ;;  %s3721_s19 = smov (!%p491_p9), 4  }
  0x18   : > { %s3751_s22 = sld [smem:[#allocation14_spill]] (!%p491_p9)  ;;  %s2931_s18 = smov (!%p491_p9), [#allocation3]  }
  0x1a   : > { %v2923_v0 = vmov 0.0   ;;  %s543_s23 = scalar_select %p542_p10, %s3046_s28, 1  ;;  %v2924_v2 = vmov 0   ;;  %vm576_vm0 = vcmask 1043456   ;;  %vm569_vm1 = vcmask 31744   ;;  %v731_v22 = vld [vmem:[%s3694_s4 + $0x8] sm:$0xff] }
  0x1b   : > { %645 = vmatprep.mubr.f32.mxu0 %v2923_v0  ;;  %v556_v1 = vld [vmem:[%s3736_s2 + $0x8] sm:$0xff]  ;;  %813 = vmatprep.mubr.f32.mxu1 %v2923_v0  ;;  %v555_v3 = vld [vmem:[%s3736_s2] sm:$0xff]  ;;  %v547_v9 = vlaneseq  ;;  %vm697_vm3 = vcmask 1039360   ;;  %vm680_vm4 = vcmask 7168   ;;  %vm742_vm6 = vcmask 392192   ;;  %vm3331_vm12 = vmneg %vm569_vm1 }
  0x1c   : > { %2850 = vset.pattern.permute.xlu0 %v2924_v2  ;;  %2851 = vset.pattern.permute.xlu1 %v2924_v2  ;;  %s2750_s29 = sshll.u32 %s543_s23, 3  ;;  %v833_v24 = vld [vmem:[%s3696_s6 + $0x8] sm:$0xff]  ;;  %v730_v25 = vld [vmem:[%s3694_s4] sm:$0xff]  ;;  %vm3152_vm5 = vmneg %vm680_vm4  ;;  %vm844_vm7 = vcmask 130048   ;;  %s3715_s23 = smov 126   ;;  %vm968_vm8 = vcmask 1031168  }
  0x1d   : > { %564 = vperm.xlu0 %2850, %v556_v1   ;;  %s546_s20 = scalar_lea.vmem %s3737_s0, %s2750_s29  ;;  %s3739_s17 = smov %s3738_s24  ;;  %v553_v6 = vld [vmem:[%s3738_s24] sm:$0xff]  ;;  %v548_v12 = vand.u32 127, %v547_v9  ;;  %v667_v41 = vld [vmem:[%s3693_s3 + $0x8] sm:$0xff]  ;;  %vm951_vm9 = vcmask 15360   ;;  %vm1239_vm11 = vcmask 1014784  }
  0x1e   : > { %v552_v4 = vld [vmem:[%s546_s20] sm:$0xff]  ;;  %v554_v7 = vld [vmem:[%s3739_s17 + $0x8] sm:$0xff]  ;;  %s2925_s24 = smov 127   ;;  %s3723_s0 = smov 1   ;;  %vm3237_vm10 = vmneg %vm951_vm9 }
  0x1f   : > { %v568_v5 = vcombine.high %v552_v4, %v552_v4  ;;  %v3102_v16 = vadd.s32 128, %v548_v12  ;;  %v832_v26 = vld [vmem:[%s3696_s6] sm:$0xff]  ;;  %v831_v57 = vld [vmem:[%s3695_s5 + $0x8] sm:$0xff]  ;;  %v2688_v12 = vld [vmem:[%s3694_s4 + $0x10] sm:$0xff]  ;;  %s3746_s29 = smov 1   ;;  %s3747_s20 = smov 126  }
  0x20   : > { %v666_v40 = vld [vmem:[%s3693_s3] sm:$0xff] }
  0x21   : > { %559 = vperm.xlu0 %2850, %v555_v3   ;;  %2678 = vmatprep.subr.msk.mxu0 %vm576_vm0, %v568_v5  ;;  %vm551_vm2 = vcmp.lt.s32.totalorder %v3102_v16, 200  ;;  %v830_v56 = vld [vmem:[%s3695_s5] sm:$0xff]  ;;  %v2732_v16 = vld [vmem:[%s3701_s11 + $0x28] sm:$0xff] }
  0x22   : > { %2679 = vmatpush1.msk.msra.mxu0 %vm576_vm0, %v552_v4 }
  0x23   : > { %2680 = vmatmul.mubr.msk.f32.vlgmr.msra.gmra.mxu0 %vm569_vm1, %v553_v6 }
  0x24   : > { %651 = vmatprep.mubr.f32.mxu0 %v2923_v0 }
  0x27   : > { %2681 = vmatmul.mubr.msk.f32.gmra.mxu0 %vm569_vm1, %v554_v7 }
  0x28   : > { %915 = vmatprep.mubr.f32.mxu0 %v2923_v0 }
  0x98   : > { %v565_v8 = vpop.permute.xlu0 %564 }
  0x9c   : > { %v560_v10 = vpop.permute.xlu0 %559 }
  0xe3   : > { %v647_v11 = vpop.f32.mrf.mxu0 }
  0xe4   : > { %v3098_v13 = vadd.f32 %v647_v11, %v560_v10  ;;  %v2689_v11 = vld [vmem:[%s3694_s4 + $0x18] sm:$0xff] }
  0xe5   : > { %v649_v14 = vpop.f32.mrf.mxu0 }
  0xe6   : > { %689 = vrot.lane.b32.xlu0 %v3098_v13, %s2925_s24  ;;  %v650_v21 = vadd.f32 %v649_v14, %v560_v10  ;;  %v2694_v14 = vld [vmem:[%s3696_s6 + $0x10] sm:$0xff] }
  0xe7   : > { %v653_v15 = vpop.f32.mrf.mxu0 }
  0xe8   : > { %v3104_v17 = vadd.f32 %v653_v15, %v565_v8  ;;  %v3124_v23 = vsel %vm551_vm2, %v650_v21, 0.0 }
  0xe9   : > { %v655_v18 = vpop.f32.mrf.mxu0 }
  0xea   : > { %v656_v19 = vadd.f32 %v655_v18, %v565_v8  ;;  %693 = vrot.lane.b32.xlu1 %v3104_v17, %s2925_s24  ;;  %676 = vrot.lane.b32.xlu0 %v3104_v17, %s3723_s0 }
  0xec   : > { %v3113_v20 = vsel %vm551_vm2, %v656_v19, 0.0 }
  0xee   : > { %695 = vrot.lane.b32.xlu1 %v3113_v20, %s2925_s24  ;;  %672 = vrot.lane.b32.xlu0 %v3098_v13, %s3723_s0 }
  0xf2   : > { %691 = vrot.lane.b32.xlu1 %v3124_v23, %s2925_s24  ;;  %739 = vperm.xlu0 %2850, %v731_v22  }
  0xf6   : > { %678 = vrot.lane.b32.xlu1 %v3113_v20, %s3723_s0  ;;  %841 = vperm.xlu0 %2850, %v833_v24  }
  0xfa   : > { %674 = vrot.lane.b32.xlu1 %v3124_v23, %s3723_s0  ;;  %s539_s0 = sand.u32 1, %s2913_s25  }
  0xfb   : > { %s3650_s30 = scalar_lea.sflag [#allocation4], %s539_s0 }
  0xfe   : > { %734 = vperm.xlu1 %2851, %v730_v25  }
 0x102   : > { %836 = vperm.xlu1 %2851, %v832_v26  }
 0x158   : > { %v690_v28 = vpop.permute.xlu0 %689 }
 0x15c   : > { %v694_v27 = vpop.permute.xlu1 %693  ;;  %v677_v33 = vpop.permute.xlu0 %676 }
 0x160   : > { %v696_v29 = vpop.permute.xlu1 %695  ;;  %v673_v37 = vpop.permute.xlu0 %672 }
 0x161   : > { %2752 = vmatprep.subr.msk.mxu1 %vm697_vm3, %v696_v29  ;;  %v699_v30 = vsel %vm697_vm3, %v694_v27, %v696_v29  ;;  %v2686_v29 = vld [vmem:[%s3693_s3 + $0x10] sm:$0xff] }
 0x162   : > { %770 = vmatpush1.msra.mxu1 %v699_v30  ;;  %v2687_v30 = vld [vmem:[%s3693_s3 + $0x18] sm:$0xff] }
 0x164   : > { %v692_v31 = vpop.permute.xlu1 %691 }
 0x165   : > { %2753 = vmatprep.subr.msk.mxu1 %vm697_vm3, %v692_v31  ;;  %v698_v32 = vsel %vm697_vm3, %v690_v28, %v692_v31 }
 0x166   : > { %772 = vmatpush1.msra.mxu1 %v698_v32 }
 0x167   : > { %2754 = vmatprep.subr.msk.mxu1 %vm551_vm2, %v656_v19 }
 0x168   : > { %v679_v34 = vpop.permute.xlu1 %678  ;;  %774 = vmatpush1.msra.mxu1 %v3104_v17 }
 0x169   : > { %2755 = vmatprep.subr.msk.mxu1 %vm551_vm2, %v650_v21  ;;  %v682_v35 = vsel %vm680_vm4, %v677_v33, %v679_v34 }
 0x16a   : > { %776 = vmatpush1.msra.mxu1 %v3098_v13 }
 0x16b   : > { %777 = vmatprep.subr.mxu1 %v682_v35 }
 0x16c   : > { %v675_v38 = vpop.permute.xlu1 %674  ;;  %2757 = vmatpush1.msk.msra.mxu1 %vm3152_vm5, %v677_v33 }
 0x16d   : > { %v681_v39 = vsel %vm680_vm4, %v673_v37, %v675_v38  ;;  %v740_v45 = vpop.permute.xlu0 %739 }
 0x16e   : > { %779 = vmatprep.subr.mxu1 %v681_v39 }
 0x16f   : > { %2759 = vmatpush1.msk.msra.mxu1 %vm3152_vm5, %v673_v37 }
 0x170   : > { %2682 = vmatmul.mubr.msk.f32.vlgmr.msra.gmra.mxu1 %vm742_vm6, %v666_v40 }
 0x171   : > { %819 = vmatprep.mubr.f32.mxu1 %v2923_v0  ;;  %v842_v60 = vpop.permute.xlu0 %841 }
 0x174   : > { %2683 = vmatmul.mubr.msk.f32.gmra.mxu1 %vm742_vm6, %v667_v41 }
 0x175   : > { %1187 = vmatprep.mubr.f32.mxu1 %v2923_v0 }
 0x179   : > { %v735_v46 = vpop.permute.xlu1 %734 }
 0x17d   : > { %v837_v63 = vpop.permute.xlu1 %836 }
 0x230   : > { %v815_v42 = vpop.f32.mrf.mxu1 }
 0x231   : > { %v816_v51 = vadd.f32 %v815_v42, %v735_v46 }
 0x232   : > { %v817_v43 = vpop.f32.mrf.mxu1 }
 0x233   : > { %v818_v49 = vadd.f32 %v817_v43, %v735_v46  ;;  %v826_v55 = vmax.f32 %v816_v51, 0.0  ;;  %v2692_v46 = vld [vmem:[%s3695_s5 + $0x10] sm:$0xff] }
 0x234   : > { %v821_v44 = vpop.f32.mrf.mxu1 }
 0x235   : > { %v822_v47 = vadd.f32 %v821_v44, %v740_v45  ;;  %v827_v54 = vmax.f32 %v818_v49, 0.0 }
 0x236   : > { %v823_v48 = vpop.f32.mrf.mxu1 }
 0x237   : > { %v824_v50 = vadd.f32 %v823_v48, %v740_v45  ;;  %v828_v53 = vmax.f32 %v822_v47, 0.0  ;;  %v2693_v47 = vld [vmem:[%s3695_s5 + $0x18] sm:$0xff] }
 0x239   : > { %v829_v52 = vmax.f32 %v824_v50, 0.0 }
 0x23b   : > { %879 = vmatprep.subr.mxu0 %v829_v52 }
 0x23c   : > { %880 = vmatpush1.msra.mxu0 %v828_v53 }
 0x23d   : > { %881 = vmatprep.subr.mxu0 %v827_v54 }
 0x23e   : > { %882 = vmatpush1.msra.mxu0 %v826_v55 }
 0x23f   : > { %2684 = vmatmul.mubr.msk.f32.vlgmr.msra.gmra.mxu0 %vm844_vm7, %v830_v56 }
 0x240   : > { %921 = vmatprep.mubr.f32.mxu0 %v2923_v0 }
 0x243   : > { %2685 = vmatmul.mubr.msk.f32.gmra.mxu0 %vm844_vm7, %v831_v57 }
 0x244   : > { %1084 = vmatprep.mubr.f32.mxu0 %v2923_v0 }
 0x2ff   : > { %v917_v58 = vpop.f32.mrf.mxu0 }
 0x300   : > { %v918_v2 = vadd.f32 %v917_v58, %v837_v63 }
 0x301   : > { %v919_v59 = vpop.f32.mrf.mxu0 }
 0x302   : > { %v920_v3 = vadd.f32 %v919_v59, %v837_v63  ;;  %v3189_v7 = vadd.f32 %v918_v2, %v3098_v13  ;;  %v2695_v13 = vld [vmem:[%s3696_s6 + $0x18] sm:$0xff]  ;;  %v2700_v2 = vld [vmem:[%s3694_s4 + $0x20] sm:$0xff] }
 0x303   : > { %v923_v61 = vpop.f32.mrf.mxu0 }
 0x304   : > { %v924_v62 = vadd.f32 %v923_v61, %v842_v60  ;;  %v929_v8 = vadd.f32 %v920_v3, %v3124_v23  ;;  %v2707_v3 = vld [vmem:[%s3696_s6 + $0x28] sm:$0xff] }
 0x305   : > { %v925_v1 = vpop.f32.mrf.mxu0 }
 0x306   : > { %v3183_v4 = vadd.f32 %v924_v62, %v3104_v17  ;;  %v926_v5 = vadd.f32 %v925_v1, %v842_v60  ;;  %v3202_v10 = vsel %vm551_vm2, %v929_v8, 0.0  ;;  %v2701_v1 = vld [vmem:[%s3694_s4 + $0x28] sm:$0xff] }
 0x308   : > { %v931_v6 = vadd.f32 %v926_v5, %v3113_v20  ;;  %964 = vrot.lane.b32.xlu0 %v3183_v4, %s3715_s23  ;;  %v1476_v5 = vld [vmem:[%s3698_s8] sm:$0xf] }
 0x30a   : > { %v3194_v9 = vsel %vm551_vm2, %v931_v6, 0.0 }
 0x30b   : > { %966 = vrot.lane.b32.xlu1 %v3194_v9, %s3715_s23 }
 0x30c   : > { %960 = vrot.lane.b32.xlu0 %v3189_v7, %s3715_s23 }
 0x30f   : > { %962 = vrot.lane.b32.xlu1 %v3202_v10, %s3715_s23  ;;  %s3717_s23 = smov 124  }
 0x310   : > { %947 = vrot.lane.b32.xlu0 %v3183_v4, %s3719_s26 }
 0x313   : > { %949 = vrot.lane.b32.xlu1 %v3194_v9, %s3719_s26 }
 0x314   : > { %943 = vrot.lane.b32.xlu0 %v3189_v7, %s3719_s26 }
 0x317   : > { %945 = vrot.lane.b32.xlu1 %v3202_v10, %s3719_s26  ;;  %s2675_s26 = sshll.u32 %s539_s0, 4 }
 0x318   : > { %1011 = vperm.xlu0 %2850, %v2689_v11  }
 0x31b   : > { %1006 = vperm.xlu1 %2851, %v2688_v12  }
 0x31c   : > { %1114 = vperm.xlu0 %2850, %v2695_v13  }
 0x31f   : > { %1109 = vperm.xlu1 %2851, %v2694_v14  }
 0x37a   : > { %v965_v15 = vpop.permute.xlu0 %964 }
 0x37d   : > { %v967_v17 = vpop.permute.xlu1 %966 }
 0x37e   : > { %v970_v18 = vsel %vm968_vm8, %v965_v15, %v967_v17  ;;  %2760 = vmatprep.subr.msk.mxu0 %vm968_vm8, %v967_v17  ;;  %v961_v19 = vpop.permute.xlu0 %960 }
 0x37f   : > { %1041 = vmatpush1.msra.mxu0 %v970_v18 }
 0x381   : > { %v963_v20 = vpop.permute.xlu1 %962 }
 0x382   : > { %v969_v21 = vsel %vm968_vm8, %v961_v19, %v963_v20  ;;  %2761 = vmatprep.subr.msk.mxu0 %vm968_vm8, %v963_v20  ;;  %v948_v22 = vpop.permute.xlu0 %947 }
 0x383   : > { %1043 = vmatpush1.msra.mxu0 %v969_v21 }
 0x384   : > { %2762 = vmatprep.subr.msk.mxu0 %vm551_vm2, %v931_v6  ;;  %v1602_v6 = vld [vmem:[%s3700_s10 + $0x8] sm:$0xff] }
 0x385   : > { %v950_v23 = vpop.permute.xlu1 %949  ;;  %1045 = vmatpush1.msra.mxu0 %v3183_v4 }
 0x386   : > { %2763 = vmatprep.subr.msk.mxu0 %vm551_vm2, %v929_v8  ;;  %v953_v24 = vsel %vm951_vm9, %v948_v22, %v950_v23  ;;  %v944_v26 = vpop.permute.xlu0 %943  ;;  %v2699_v23 = vld [vmem:[%s3693_s3 + $0x28] sm:$0xff] }
 0x387   : > { %1047 = vmatpush1.msra.mxu0 %v3189_v7 }
 0x388   : > { %1048 = vmatprep.subr.mxu0 %v953_v24 }
 0x389   : > { %v946_v27 = vpop.permute.xlu1 %945  ;;  %2765 = vmatpush1.msk.msra.mxu0 %vm3237_vm10, %v948_v22  ;;  %v2698_v22 = vld [vmem:[%s3693_s3 + $0x20] sm:$0xff] }
 0x38a   : > { %v952_v28 = vsel %vm951_vm9, %v944_v26, %v946_v27 }
 0x38b   : > { %1050 = vmatprep.subr.mxu0 %v952_v28 }
 0x38c   : > { %2767 = vmatpush1.msk.msra.mxu0 %vm3237_vm10, %v944_v26 }
 0x38d   : > { %2690 = vmatmul.mubr.msk.f32.vlgmr.msra.gmra.mxu0 %vm742_vm6, %v2686_v29 }
 0x38e   : > { %1090 = vmatprep.mubr.f32.mxu0 %v2923_v0 }
 0x391   : > { %2691 = vmatmul.mubr.msk.f32.gmra.mxu0 %vm742_vm6, %v2687_v30 }
 0x392   : > { %1458 = vmatprep.mubr.f32.mxu0 %v2923_v0 }
 0x393   : > { %v1012_v34 = vpop.permute.xlu0 %1011 }
 0x396   : > { %v1007_v35 = vpop.permute.xlu1 %1006 }
 0x397   : > { %v1115_v50 = vpop.permute.xlu0 %1114 }
 0x39a   : > { %v1110_v53 = vpop.permute.xlu1 %1109 }
 0x44d   : > { %v1086_v31 = vpop.f32.mrf.mxu0 }
 0x44e   : > { %v1087_v41 = vadd.f32 %v1086_v31, %v1007_v35 }
 0x44f   : > { %v1088_v32 = vpop.f32.mrf.mxu0 }
 0x450   : > { %v1089_v39 = vadd.f32 %v1088_v32, %v1007_v35  ;;  %v1097_v45 = vmax.f32 %v1087_v41, 0.0  ;;  %v2705_v41 = vld [vmem:[%s3695_s5 + $0x28] sm:$0xff] }
 0x451   : > { %v1092_v33 = vpop.f32.mrf.mxu0 }
 0x452   : > { %v1093_v37 = vadd.f32 %v1092_v33, %v1012_v34  ;;  %v1098_v44 = vmax.f32 %v1089_v39, 0.0 }
 0x453   : > { %v1094_v38 = vpop.f32.mrf.mxu0 }
 0x454   : > { %v1095_v40 = vadd.f32 %v1094_v38, %v1012_v34  ;;  %v1099_v43 = vmax.f32 %v1093_v37, 0.0 }
 0x456   : > { %v1100_v42 = vmax.f32 %v1095_v40, 0.0  ;;  %v2704_v40 = vld [vmem:[%s3695_s5 + $0x20] sm:$0xff] }
 0x458   : > { %1151 = vmatprep.subr.mxu1 %v1100_v42 }
 0x459   : > { %1152 = vmatpush1.msra.mxu1 %v1099_v43 }
 0x45a   : > { %1153 = vmatprep.subr.mxu1 %v1098_v44 }
 0x45b   : > { %1154 = vmatpush1.msra.mxu1 %v1097_v45 }
 0x45c   : > { %2696 = vmatmul.mubr.msk.f32.vlgmr.msra.gmra.mxu1 %vm844_vm7, %v2692_v46 }
 0x45d   : > { %1193 = vmatprep.mubr.f32.mxu1 %v2923_v0 }
 0x460   : > { %2697 = vmatmul.mubr.msk.f32.gmra.mxu1 %vm844_vm7, %v2693_v47 }
 0x461   : > { %1355 = vmatprep.mubr.f32.mxu1 %v2923_v0 }
 0x51c   : > { %v1189_v48 = vpop.f32.mrf.mxu1 }
 0x51d   : > { %v1190_v55 = vadd.f32 %v1189_v48, %v1110_v53 }
 0x51e   : > { %v1191_v49 = vpop.f32.mrf.mxu1 }
 0x51f   : > { %v1192_v56 = vadd.f32 %v1191_v49, %v1110_v53  ;;  %v3274_v60 = vadd.f32 %v1190_v55, %v3189_v7  ;;  %v1601_v7 = vld [vmem:[%s3700_s10] sm:$0xff] }
 0x520   : > { %v1195_v51 = vpop.f32.mrf.mxu1 }
 0x521   : > { %v1196_v52 = vadd.f32 %v1195_v51, %v1115_v50  ;;  %v1201_v61 = vadd.f32 %v1192_v56, %v3202_v10  ;;  %v1475_v56 = vld [vmem:[%s3697_s7] sm:$0xf] }
 0x522   : > { %v1197_v54 = vpop.f32.mrf.mxu1 }
 0x523   : > { %v3268_v57 = vadd.f32 %v1196_v52, %v3183_v4  ;;  %v1198_v58 = vadd.f32 %v1197_v54, %v1115_v50  ;;  %v3287_v63 = vsel %vm551_vm2, %v1201_v61, 0.0  ;;  %v2706_v4 = vld [vmem:[%s3696_s6 + $0x20] sm:$0xff] }
 0x525   : > { %v1203_v59 = vadd.f32 %v1198_v58, %v3194_v9  ;;  %1235 = vrot.lane.b32.xlu0 %v3268_v57, %s3717_s23 }
 0x527   : > { %v3279_v62 = vsel %vm551_vm2, %v1203_v59, 0.0 }
 0x528   : > { %1237 = vrot.lane.b32.xlu1 %v3279_v62, %s3717_s23 }
 0x529   : > { %1231 = vrot.lane.b32.xlu0 %v3274_v60, %s3717_s23 }
 0x52c   : > { %1233 = vrot.lane.b32.xlu1 %v3287_v63, %s3717_s23  ;;  %s3375_s23 = scalar_lea.vmem [#allocation3], %s2675_s26 }
 0x52d   : > { %1219 = vrot.lane.b32.xlu0 %v3268_v57, %s3721_s19  ;;  %s2609_s26 = sshll.u32 %s3375_s23, 4  ;;  %s3640_s26 = int_to_ptr.vmem [resolvable:$true] %s2609_s26 }
 0x530   : > { %1221 = vrot.lane.b32.xlu1 %v3279_v62, %s3721_s19 }
 0x531   : > { %1215 = vrot.lane.b32.xlu0 %v3274_v60, %s3721_s19 }
 0x534   : > { %1217 = vrot.lane.b32.xlu1 %v3287_v63, %s3721_s19  ;;  %s2751_s19 = sshll.u32 %s3046_s28, 7  ;;  %s2861_s28 = scalar_lea.vmem %s3640_s26, 256 }
 0x535   : > { %1282 = vperm.xlu0 %2850, %v2701_v1   ;;  %p2862_p11 = scmp.ne.s32.totalorder %s3640_s26, %s2861_s28 }
 0x537   : > { %p2863_p12 = pnand %p2862_p11, %p3063_p5 }
 0x538   : > { %1277 = vperm.xlu1 %2851, %v2700_v2  }
 0x539   : > { %1385 = vperm.xlu0 %2850, %v2707_v3   ;;  %p2864_p13 = pneg %p2863_p12 }
 0x53c   : > { %1380 = vperm.xlu1 %2851, %v2706_v4  }
 0x53d   : > { %1479 = vperm.xlu0 %2850, %v1476_v5  }
 0x540   : > { %1610 = vperm.xlu1 %2851, %v1602_v6  }
 0x541   : > { %1605 = vperm.xlu0 %2850, %v1601_v7  }
 0x597   : > { %v1236_v8 = vpop.permute.xlu0 %1235 }
 0x59a   : > { %v1238_v9 = vpop.permute.xlu1 %1237 }
 0x59b   : > { %v1241_v10 = vsel %vm1239_vm11, %v1236_v8, %v1238_v9  ;;  %2768 = vmatprep.subr.msk.mxu1 %vm1239_vm11, %v1238_v9  ;;  %v1232_v11 = vpop.permute.xlu0 %1231 }
 0x59c   : > { %1312 = vmatpush1.msra.mxu1 %v1241_v10 }
 0x59e   : > { %v1234_v12 = vpop.permute.xlu1 %1233 }
 0x59f   : > { %v1240_v13 = vsel %vm1239_vm11, %v1232_v11, %v1234_v12  ;;  %2769 = vmatprep.subr.msk.mxu1 %vm1239_vm11, %v1234_v12  ;;  %v1220_v14 = vpop.permute.xlu0 %1219 }
 0x5a0   : > { %1314 = vmatpush1.msra.mxu1 %v1240_v13 }
 0x5a1   : > { %2770 = vmatprep.subr.msk.mxu1 %vm551_vm2, %v1203_v59 }
 0x5a2   : > { %v1222_v15 = vpop.permute.xlu1 %1221  ;;  %1316 = vmatpush1.msra.mxu1 %v3268_v57 }
 0x5a3   : > { %2771 = vmatprep.subr.msk.mxu1 %vm551_vm2, %v1201_v61  ;;  %v1224_v17 = vsel %vm569_vm1, %v1220_v14, %v1222_v15  ;;  %v1216_v19 = vpop.permute.xlu0 %1215 }
 0x5a4   : > { %1318 = vmatpush1.msra.mxu1 %v3274_v60 }
 0x5a5   : > { %1319 = vmatprep.subr.mxu1 %v1224_v17 }
 0x5a6   : > { %v1218_v20 = vpop.permute.xlu1 %1217  ;;  %2773 = vmatpush1.msk.msra.mxu1 %vm3331_vm12, %v1220_v14 }
 0x5a7   : > { %v1223_v21 = vsel %vm569_vm1, %v1216_v19, %v1218_v20 }
 0x5a8   : > { %1321 = vmatprep.subr.mxu1 %v1223_v21 }
 0x5a9   : > { %2775 = vmatpush1.msk.msra.mxu1 %vm3331_vm12, %v1216_v19 }
 0x5aa   : > { %2702 = vmatmul.mubr.msk.f32.vlgmr.msra.gmra.mxu1 %vm742_vm6, %v2698_v22 }
 0x5ab   : > { %1361 = vmatprep.mubr.f32.mxu1 %v2923_v0 }
 0x5ae   : > { %2703 = vmatmul.mubr.msk.f32.gmra.mxu1 %vm742_vm6, %v2699_v23 }
 0x5af   : > { %1689 = vmatprep.mubr.f32.mxu1 %v2923_v0 }
 0x5b0   : > { %v1283_v28 = vpop.permute.xlu0 %1282 }
 0x5b3   : > { %v1278_v29 = vpop.permute.xlu1 %1277 }
 0x5b4   : > { %v1386_v45 = vpop.permute.xlu0 %1385 }
 0x5b7   : > { %v1381_v46 = vpop.permute.xlu1 %1380 }
 0x5b8   : > { %v1480_v58 = vpop.permute.xlu0 %1479 }
 0x66a   : > { %v1357_v24 = vpop.f32.mrf.mxu1 }
 0x66b   : > { %v1358_v34 = vadd.f32 %v1357_v24, %v1278_v29 }
 0x66c   : > { %v1359_v26 = vpop.f32.mrf.mxu1 }
 0x66d   : > { %v1360_v32 = vadd.f32 %v1359_v26, %v1278_v29  ;;  %v1368_v39 = vmax.f32 %v1358_v34, 0.0 }
 0x66e   : > { %v1363_v27 = vpop.f32.mrf.mxu1 }
 0x66f   : > { %v1364_v30 = vadd.f32 %v1363_v27, %v1283_v28  ;;  %v1369_v38 = vmax.f32 %v1360_v32, 0.0 }
 0x670   : > { %v1365_v31 = vpop.f32.mrf.mxu1 }
 0x671   : > { %v1366_v33 = vadd.f32 %v1365_v31, %v1283_v28  ;;  %v1370_v37 = vmax.f32 %v1364_v30, 0.0 }
 0x673   : > { %v1371_v35 = vmax.f32 %v1366_v33, 0.0 }
 0x675   : > { %1422 = vmatprep.subr.mxu0 %v1371_v35 }
 0x676   : > { %1423 = vmatpush1.msra.mxu0 %v1370_v37 }
 0x677   : > { %1424 = vmatprep.subr.mxu0 %v1369_v38 }
 0x678   : > { %1425 = vmatpush1.msra.mxu0 %v1368_v39 }
 0x679   : > { %2708 = vmatmul.mubr.msk.f32.vlgmr.msra.gmra.mxu0 %vm844_vm7, %v2704_v40 }
 0x67a   : > { %1464 = vmatprep.mubr.f32.mxu0 %v2923_v0 }
 0x67d   : > { %2709 = vmatmul.mubr.msk.f32.gmra.mxu0 %vm844_vm7, %v2705_v41 }
 0x67e   : > { %1549 = vmatprep.mubr.f32.mxu0 %v2923_v0 }
 0x739   : > { %v1460_v42 = vpop.f32.mrf.mxu0 }
 0x73a   : > { %v1461_v51 = vadd.f32 %v1460_v42, %v1381_v46  ;;  %v1599_v42 = vld [vmem:[%s3699_s9] sm:$0xff] }
 0x73b   : > { %v1462_v43 = vpop.f32.mrf.mxu0 }
 0x73c   : > { %v1463_v49 = vadd.f32 %v1462_v43, %v1381_v46  ;;  %v1471_v55 = vadd.f32 %v1461_v51, %v3274_v60  ;;  %v1600_v43 = vld [vmem:[%s3699_s9 + $0x8] sm:$0xff]  ;;  %v1611_v46 = vpop.permute.xlu1 %1610  ;;  %v1606_v51 = vpop.permute.xlu0 %1605 }
 0x73d   : > { %v1466_v44 = vpop.f32.mrf.mxu0 }
 0x73e   : > { %v1467_v47 = vadd.f32 %v1466_v44, %v1386_v45  ;;  %v1472_v54 = vadd.f32 %v1463_v49, %v3287_v63 }
 0x73f   : > { %v1468_v48 = vpop.f32.mrf.mxu0 }
 0x740   : > { %v1469_v50 = vadd.f32 %v1468_v48, %v1386_v45  ;;  %v1473_v53 = vadd.f32 %v1467_v47, %v3268_v57 }
 0x742   : > { %v1474_v52 = vadd.f32 %v1469_v50, %v3279_v62 }
 0x744   : > { %1513 = vmatprep.subr.mxu0 %v1474_v52 }
 0x745   : > { %1514 = vmatpush1.msra.mxu0 %v1473_v53 }
 0x746   : > { %1515 = vmatprep.subr.mxu0 %v1472_v54 }
 0x747   : > { %1516 = vmatpush1.msra.mxu0 %v1471_v55 }
 0x748   : > { %2710 = vmatmul.mubr.msk.f32.vlgmr.msra.gmra.mxu0 %vm844_vm7, %v1475_v56  ;;  %v1769_v56 = vld [vmem:[%s3702_s12 + $0x8] sm:$0xff] }
 0x749   : > { %1850 = vmatprep.mubr.f32.mxu0 %v2923_v0 }
 0x808   : > { %v1551_v59 = vpop.f32.mrf.mxu0 }
 0x809   : > { %v1552_v57 = vadd.f32 %v1551_v59, %v1480_v58  ;;  %v1870_v59 = vld [vmem:[%s3704_s14 + $0x8] sm:$0xff] }
 0x80a   : > { %v1553_v61 = vpop.f32.mrf.mxu0 }
 0x80b   : > { %v1561_v60 = vsel %vm576_vm0, %v1552_v57, -inf  ;;  %v1554_v62 = vadd.f32 %v1553_v61, %v1480_v58  ;;  %v1768_v58 = vld [vmem:[%s3702_s12] sm:$0xff] }
 0x80c   : > { %v1562_v63 = vrot.slane %v1561_v60, 4 }
 0x80d   : > { %v1558_v1 = vcombine.low %v1552_v57, %v1554_v62  ;;  %v1568_v2 = vsel %vm576_vm0, %v1554_v62, -inf }
 0x80e   : > { %v1563_v3 = vmax.f32 %v1561_v60, %v1562_v63  ;;  %v1569_v4 = vrot.slane %v1568_v2, 4 }
 0x80f   : > { %1560 = vst [vmem:[%s3375_s23] sm:$0xff] %v1558_v1 }
 0x810   : > { %v1564_v5 = vrot.slane %v1563_v3, 2  ;;  %v1570_v6 = vmax.f32 %v1568_v2, %v1569_v4 }
 0x812   : > { %v1565_v7 = vmax.f32 %v1563_v3, %v1564_v5  ;;  %v1571_v8 = vrot.slane %v1570_v6, 2 }
 0x814   : > { %v1566_v9 = vrot.slane %v1565_v7, 1  ;;  %v1572_v10 = vmax.f32 %v1570_v6, %v1571_v8 }
 0x816   : > { %v1567_v11 = vmax.f32 %v1565_v7, %v1566_v9  ;;  %v1573_v12 = vrot.slane %v1572_v10, 1  ;;  %v1706_v9 = vld [vmem:[%s3701_s11] sm:$0xff] }
 0x818   : > { %v1575_v13 = vsub.f32 %v1552_v57, %v1567_v11  ;;  %v1574_v14 = vmax.f32 %v1572_v10, %v1573_v12  ;;  %v1869_v57 = vld [vmem:[%s3704_s14] sm:$0xff]  ;;  %v1707_v10 = vld [vmem:[%s3701_s11 + $0x8] sm:$0xff] }
 0x81a   : > { %v1577_v15 = vmul.f32 1.442695, %v1575_v13  ;;  %v1576_v17 = vsub.f32 %v1554_v62, %v1574_v14 }
 0x81c   : > { %2853 = vpow2.f32 %v1577_v15  ;;  %v1579_v19 = vmul.f32 1.442695, %v1576_v17 }
 0x81e   : > { %2855 = vpow2.f32 %v1579_v19 }
 0x829   : > { %v2854_v20 = vpop.eup %2853 }
 0x82a   : > { %v1581_v21 = vsel %vm576_vm0, %v2854_v20, 0.0 }
 0x82b   : > { %v2856_v22 = vpop.eup %2855  ;;  %v1582_v23 = vrot.slane %v1581_v21, 4 }
 0x82c   : > { %v1588_v24 = vsel %vm576_vm0, %v2856_v22, 0.0 }
 0x82d   : > { %v1583_v26 = vadd.f32 %v1582_v23, %v1581_v21  ;;  %v1589_v27 = vrot.slane %v1588_v24, 4 }
 0x82f   : > { %v1584_v28 = vrot.slane %v1583_v26, 2  ;;  %v1590_v29 = vadd.f32 %v1589_v27, %v1588_v24  ;;  %v1867_v27 = vld [vmem:[%s3703_s13] sm:$0xff] }
 0x831   : > { %v1585_v30 = vadd.f32 %v1584_v28, %v1583_v26  ;;  %v1591_v31 = vrot.slane %v1590_v29, 2  ;;  %v1868_v28 = vld [vmem:[%s3703_s13 + $0x8] sm:$0xff] }
 0x833   : > { %v1586_v32 = vrot.slane %v1585_v30, 1  ;;  %v1592_v33 = vadd.f32 %v1591_v31, %v1590_v29 }
 0x835   : > { %v1587_v34 = vadd.f32 %v1586_v32, %v1585_v30  ;;  %v1593_v35 = vrot.slane %v1592_v33, 1 }
 0x837   : > { %v1594_v37 = vadd.f32 %v1593_v35, %v1592_v33  ;;  %2857 = vrcp.f32 %v1587_v34 }
 0x839   : > { %2859 = vrcp.f32 %v1594_v37 }
 0x844   : > { %v2858_v38 = vpop.eup %2857 }
 0x845   : > { %v1597_v41 = vmul.f32 %v2858_v38, %v2854_v20 }
 0x846   : > { %v2860_v39 = vpop.eup %2859 }
 0x847   : > { %v1598_v40 = vmul.f32 %v2860_v39, %v2856_v22 }
 0x849   : > { %2711 = vmatprep.subr.msk.mxu1 %vm576_vm0, %v1598_v40 }
 0x84a   : > { %2712 = vmatpush1.msk.msra.mxu1 %vm576_vm0, %v1597_v41 }
 0x84b   : > { %2713 = vmatmul.mubr.msk.f32.vlgmr.msra.gmra.mxu1 %vm569_vm1, %v1599_v42 }
 0x84c   : > { %1695 = vmatprep.mubr.f32.mxu1 %v2923_v0 }
 0x84f   : > { %2714 = vmatmul.mubr.msk.f32.gmra.mxu1 %vm569_vm1, %v1600_v43 }
 0x850   : > { %1951 = vmatprep.mubr.f32.mxu1 %v2923_v0 }
 0x90b   : > { %v1691_v44 = vpop.f32.mrf.mxu1 }
 0x90c   : > { %v3396_v52 = vadd.f32 %v1691_v44, %v1606_v51 }
 0x90d   : > { %v1693_v45 = vpop.f32.mrf.mxu1 }
 0x90e   : > { %v1694_v53 = vadd.f32 %v1693_v45, %v1606_v51 }
 0x90f   : > { %v1697_v47 = vpop.f32.mrf.mxu1 }
 0x910   : > { %v3392_v48 = vadd.f32 %v1697_v47, %v1611_v46  ;;  %v3408_v55 = vsel %vm551_vm2, %v1694_v53, 0.0  ;;  %v2721_v47 = vld [vmem:[%s3702_s12 + $0x10] sm:$0xff] }
 0x911   : > { %v1699_v49 = vpop.f32.mrf.mxu1 }
 0x912   : > { %v1700_v50 = vadd.f32 %v1699_v49, %v1611_v46  ;;  %1732 = vrot.lane.b32.xlu1 %v3392_v48, %s2925_s24  ;;  %v2722_v46 = vld [vmem:[%s3702_s12 + $0x18] sm:$0xff]  ;;  %v2727_v49 = vld [vmem:[%s3704_s14 + $0x10] sm:$0xff] }
 0x914   : > { %v3400_v54 = vsel %vm551_vm2, %v1700_v50, 0.0 }
 0x915   : > { %1734 = vrot.lane.b32.xlu0 %v3400_v54, %s2925_s24 }
 0x916   : > { %1728 = vrot.lane.b32.xlu1 %v3396_v52, %s2925_s24 }
 0x919   : > { %1730 = vrot.lane.b32.xlu0 %v3408_v55, %s2925_s24 }
 0x91a   : > { %1716 = vrot.lane.b32.xlu1 %v3392_v48, %s3746_s29 }
 0x91d   : > { %1718 = vrot.lane.b32.xlu0 %v3400_v54, %s3746_s29 }
 0x91e   : > { %1712 = vrot.lane.b32.xlu1 %v3396_v52, %s3746_s29 }
 0x921   : > { %1714 = vrot.lane.b32.xlu0 %v3408_v55, %s3746_s29  ;;  %s3748_s29 = smov 2  }
 0x922   : > { %1777 = vperm.xlu1 %2851, %v1769_v56  }
 0x925   : > { %1772 = vperm.xlu0 %2850, %v1768_v58  }
 0x926   : > { %1878 = vperm.xlu1 %2851, %v1870_v59  }
 0x929   : > { %1873 = vperm.xlu0 %2850, %v1869_v57  }
 0x984   : > { %v1733_v61 = vpop.permute.xlu1 %1732 }
 0x987   : > { %v1735_v60 = vpop.permute.xlu0 %1734 }
 0x988   : > { %v1737_v62 = vsel %vm697_vm3, %v1733_v61, %v1735_v60  ;;  %v1729_v63 = vpop.permute.xlu1 %1728  ;;  %2776 = vmatprep.subr.msk.mxu0 %vm697_vm3, %v1735_v60 }
 0x989   : > { %1807 = vmatpush1.msra.mxu0 %v1737_v62  ;;  %v2719_v62 = vld [vmem:[%s3701_s11 + $0x10] sm:$0xff] }
 0x98b   : > { %v1731_v1 = vpop.permute.xlu0 %1730 }
 0x98c   : > { %v1736_v2 = vsel %vm697_vm3, %v1729_v63, %v1731_v1  ;;  %2777 = vmatprep.subr.msk.mxu0 %vm697_vm3, %v1731_v1  ;;  %v1717_v3 = vpop.permute.xlu1 %1716  ;;  %v2720_v63 = vld [vmem:[%s3701_s11 + $0x18] sm:$0xff] }
 0x98d   : > { %1809 = vmatpush1.msra.mxu0 %v1736_v2 }
 0x98e   : > { %2778 = vmatprep.subr.msk.mxu0 %vm551_vm2, %v1700_v50 }
 0x98f   : > { %1811 = vmatpush1.msra.mxu0 %v3392_v48  ;;  %v1719_v4 = vpop.permute.xlu0 %1718 }
 0x990   : > { %2779 = vmatprep.subr.msk.mxu0 %vm551_vm2, %v1694_v53  ;;  %v1721_v5 = vsel %vm680_vm4, %v1717_v3, %v1719_v4  ;;  %v1713_v6 = vpop.permute.xlu1 %1712 }
 0x991   : > { %1813 = vmatpush1.msra.mxu0 %v3396_v52 }
 0x992   : > { %1814 = vmatprep.subr.mxu0 %v1721_v5 }
 0x993   : > { %2781 = vmatpush1.msk.msra.mxu0 %vm3152_vm5, %v1717_v3  ;;  %v1715_v7 = vpop.permute.xlu0 %1714 }
 0x994   : > { %v1720_v8 = vsel %vm680_vm4, %v1713_v6, %v1715_v7 }
 0x995   : > { %1816 = vmatprep.subr.mxu0 %v1720_v8 }
 0x996   : > { %2783 = vmatpush1.msk.msra.mxu0 %vm3152_vm5, %v1713_v6 }
 0x997   : > { %2715 = vmatmul.mubr.msk.f32.vlgmr.msra.gmra.mxu0 %vm742_vm6, %v1706_v9 }
 0x998   : > { %1856 = vmatprep.mubr.f32.mxu0 %v2923_v0 }
 0x99b   : > { %2716 = vmatmul.mubr.msk.f32.gmra.mxu0 %vm742_vm6, %v1707_v10 }
 0x99c   : > { %2221 = vmatprep.mubr.f32.mxu0 %v2923_v0 }
 0x99d   : > { %v1778_v14 = vpop.permute.xlu1 %1777 }
 0x9a0   : > { %v1773_v15 = vpop.permute.xlu0 %1772 }
 0x9a1   : > { %v1879_v31 = vpop.permute.xlu1 %1878 }
 0x9a4   : > { %v1874_v34 = vpop.permute.xlu0 %1873 }
 0xa57   : > { %v1852_v11 = vpop.f32.mrf.mxu0 }
 0xa58   : > { %v1853_v21 = vadd.f32 %v1852_v11, %v1773_v15 }
 0xa59   : > { %v1854_v12 = vpop.f32.mrf.mxu0 }
 0xa5a   : > { %v1855_v19 = vadd.f32 %v1854_v12, %v1773_v15  ;;  %v1863_v26 = vmax.f32 %v1853_v21, 0.0  ;;  %v2726_v15 = vld [vmem:[%s3703_s13 + $0x18] sm:$0xff] }
 0xa5b   : > { %v1858_v13 = vpop.f32.mrf.mxu0 }
 0xa5c   : > { %v1859_v17 = vadd.f32 %v1858_v13, %v1778_v14  ;;  %v1864_v24 = vmax.f32 %v1855_v19, 0.0 }
 0xa5d   : > { %v1860_v36 = vpop.f32.mrf.mxu0 }
 0xa5e   : > { %v1861_v20 = vadd.f32 %v1860_v36, %v1778_v14  ;;  %v1865_v23 = vmax.f32 %v1859_v17, 0.0  ;;  %v2725_v14 = vld [vmem:[%s3703_s13 + $0x10] sm:$0xff] }
 0xa60   : > { %v1866_v22 = vmax.f32 %v1861_v20, 0.0 }
 0xa62   : > { %1915 = vmatprep.subr.mxu1 %v1866_v22 }
 0xa63   : > { %1916 = vmatpush1.msra.mxu1 %v1865_v23 }
 0xa64   : > { %1917 = vmatprep.subr.mxu1 %v1864_v24 }
 0xa65   : > { %1918 = vmatpush1.msra.mxu1 %v1863_v26 }
 0xa66   : > { %2717 = vmatmul.mubr.msk.f32.vlgmr.msra.gmra.mxu1 %vm844_vm7, %v1867_v27 }
 0xa67   : > { %1957 = vmatprep.mubr.f32.mxu1 %v2923_v0 }
 0xa6a   : > { %2718 = vmatmul.mubr.msk.f32.gmra.mxu1 %vm844_vm7, %v1868_v28 }
 0xa6b   : > { %2118 = vmatprep.mubr.f32.mxu1 %v2923_v0 }
 0xb26   : > { %v1953_v29 = vpop.f32.mrf.mxu1 }
 0xb27   : > { %v1954_v37 = vadd.f32 %v1953_v29, %v1874_v34 }
 0xb28   : > { %v1955_v30 = vpop.f32.mrf.mxu1 }
 0xb29   : > { %v1956_v38 = vadd.f32 %v1955_v30, %v1874_v34  ;;  %v3475_v42 = vadd.f32 %v1954_v37, %v3396_v52  ;;  %v2734_v34 = vld [vmem:[%s3702_s12 + $0x28] sm:$0xff] }
 0xb2a   : > { %v1959_v32 = vpop.f32.mrf.mxu1  ;;  %v2740_v37 = vld [vmem:[%s3704_s14 + $0x28] sm:$0xff] }
 0xb2b   : > { %v1960_v33 = vadd.f32 %v1959_v32, %v1879_v31  ;;  %v1965_v43 = vadd.f32 %v1956_v38, %v3408_v55  ;;  %v2739_v38 = vld [vmem:[%s3704_s14 + $0x20] sm:$0xff] }
 0xb2c   : > { %v1961_v35 = vpop.f32.mrf.mxu1 }
 0xb2d   : > { %v3469_v39 = vadd.f32 %v1960_v33, %v3392_v48  ;;  %v1962_v40 = vadd.f32 %v1961_v35, %v1879_v31  ;;  %v3488_v45 = vsel %vm551_vm2, %v1965_v43, 0.0  ;;  %v2728_v48 = vld [vmem:[%s3704_s14 + $0x18] sm:$0xff]  ;;  %v2733_v35 = vld [vmem:[%s3702_s12 + $0x20] sm:$0xff] }
 0xb2f   : > { %v1967_v41 = vadd.f32 %v1962_v40, %v3400_v54  ;;  %1999 = vrot.lane.b32.xlu1 %v3469_v39, %s3747_s20 }
 0xb31   : > { %v3480_v44 = vsel %vm551_vm2, %v1967_v41, 0.0 }
 0xb32   : > { %2001 = vrot.lane.b32.xlu0 %v3480_v44, %s3747_s20 }
 0xb33   : > { %1995 = vrot.lane.b32.xlu1 %v3475_v42, %s3747_s20 }
 0xb36   : > { %1997 = vrot.lane.b32.xlu0 %v3488_v45, %s3747_s20  ;;  %s3749_s20 = smov 124  }
 0xb37   : > { %1983 = vrot.lane.b32.xlu1 %v3469_v39, %s3748_s29 }
 0xb3a   : > { %1985 = vrot.lane.b32.xlu0 %v3480_v44, %s3748_s29 }
 0xb3b   : > { %1979 = vrot.lane.b32.xlu1 %v3475_v42, %s3748_s29 }
 0xb3e   : > { %1981 = vrot.lane.b32.xlu0 %v3488_v45, %s3748_s29  ;;  %s3750_s29 = smov 4  }
 0xb3f   : > { %2045 = vperm.xlu1 %2851, %v2722_v46  }
 0xb42   : > { %2040 = vperm.xlu0 %2850, %v2721_v47  }
 0xb43   : > { %2148 = vperm.xlu1 %2851, %v2728_v48  }
 0xb46   : > { %2143 = vperm.xlu0 %2850, %v2727_v49  }
 0xba1   : > { %v2000_v50 = vpop.permute.xlu1 %1999 }
 0xba4   : > { %v2002_v51 = vpop.permute.xlu0 %2001 }
 0xba5   : > { %v2004_v52 = vsel %vm968_vm8, %v2000_v50, %v2002_v51  ;;  %v1996_v53 = vpop.permute.xlu1 %1995  ;;  %2784 = vmatprep.subr.msk.mxu1 %vm968_vm8, %v2002_v51 }
 0xba6   : > { %2075 = vmatpush1.msra.mxu1 %v2004_v52  ;;  %v2731_v52 = vld [vmem:[%s3701_s11 + $0x20] sm:$0xff] }
 0xba8   : > { %v1998_v54 = vpop.permute.xlu0 %1997 }
 0xba9   : > { %v2003_v55 = vsel %vm968_vm8, %v1996_v53, %v1998_v54  ;;  %2785 = vmatprep.subr.msk.mxu1 %vm968_vm8, %v1998_v54  ;;  %v1984_v56 = vpop.permute.xlu1 %1983 }
 0xbaa   : > { %2077 = vmatpush1.msra.mxu1 %v2003_v55 }
 0xbab   : > { %2786 = vmatprep.subr.msk.mxu1 %vm551_vm2, %v1967_v41 }
 0xbac   : > { %2079 = vmatpush1.msra.mxu1 %v3469_v39  ;;  %v1986_v58 = vpop.permute.xlu0 %1985 }
 0xbad   : > { %2787 = vmatprep.subr.msk.mxu1 %vm551_vm2, %v1965_v43  ;;  %v1988_v59 = vsel %vm951_vm9, %v1984_v56, %v1986_v58  ;;  %v1980_v57 = vpop.permute.xlu1 %1979 }
 0xbae   : > { %2081 = vmatpush1.msra.mxu1 %v3475_v42 }
 0xbaf   : > { %2082 = vmatprep.subr.mxu1 %v1988_v59 }
 0xbb0   : > { %2789 = vmatpush1.msk.msra.mxu1 %vm3237_vm10, %v1984_v56  ;;  %v1982_v61 = vpop.permute.xlu0 %1981 }
 0xbb1   : > { %v1987_v60 = vsel %vm951_vm9, %v1980_v57, %v1982_v61 }
 0xbb2   : > { %2084 = vmatprep.subr.mxu1 %v1987_v60 }
 0xbb3   : > { %2791 = vmatpush1.msk.msra.mxu1 %vm3237_vm10, %v1980_v57 }
 0xbb4   : > { %2723 = vmatmul.mubr.msk.f32.vlgmr.msra.gmra.mxu1 %vm742_vm6, %v2719_v62 }
 0xbb5   : > { %2124 = vmatprep.mubr.f32.mxu1 %v2923_v0 }
 0xbb8   : > { %2724 = vmatmul.mubr.msk.f32.gmra.mxu1 %vm742_vm6, %v2720_v63 }
 0xbb9   : > { %2491 = vmatprep.mubr.f32.mxu1 %v2923_v0 }
 0xbba   : > { %v2046_v4 = vpop.permute.xlu1 %2045 }
 0xbbd   : > { %v2041_v5 = vpop.permute.xlu0 %2040 }
 0xbbe   : > { %v2149_v19 = vpop.permute.xlu1 %2148 }
 0xbc1   : > { %v2144_v22 = vpop.permute.xlu0 %2143 }
 0xc74   : > { %v2120_v1 = vpop.f32.mrf.mxu1 }
 0xc75   : > { %v2121_v9 = vadd.f32 %v2120_v1, %v2041_v5 }
 0xc76   : > { %v2122_v2 = vpop.f32.mrf.mxu1 }
 0xc77   : > { %v2123_v7 = vadd.f32 %v2122_v2, %v2041_v5  ;;  %v2131_v13 = vmax.f32 %v2121_v9, 0.0 }
 0xc78   : > { %v2126_v3 = vpop.f32.mrf.mxu1 }
 0xc79   : > { %v2127_v6 = vadd.f32 %v2126_v3, %v2046_v4  ;;  %v2132_v12 = vmax.f32 %v2123_v7, 0.0  ;;  %v2737_v3 = vld [vmem:[%s3703_s13 + $0x20] sm:$0xff] }
 0xc7a   : > { %v2128_v25 = vpop.f32.mrf.mxu1 }
 0xc7b   : > { %v2129_v8 = vadd.f32 %v2128_v25, %v2046_v4  ;;  %v2133_v11 = vmax.f32 %v2127_v6, 0.0  ;;  %v2738_v4 = vld [vmem:[%s3703_s13 + $0x28] sm:$0xff] }
 0xc7d   : > { %v2134_v10 = vmax.f32 %v2129_v8, 0.0 }
 0xc7f   : > { %2185 = vmatprep.subr.mxu0 %v2134_v10 }
 0xc80   : > { %2186 = vmatpush1.msra.mxu0 %v2133_v11 }
 0xc81   : > { %2187 = vmatprep.subr.mxu0 %v2132_v12 }
 0xc82   : > { %2188 = vmatpush1.msra.mxu0 %v2131_v13 }
 0xc83   : > { %2729 = vmatmul.mubr.msk.f32.vlgmr.msra.gmra.mxu0 %vm844_vm7, %v2725_v14 }
 0xc84   : > { %2227 = vmatprep.mubr.f32.mxu0 %v2923_v0 }
 0xc87   : > { %2730 = vmatmul.mubr.msk.f32.gmra.mxu0 %vm844_vm7, %v2726_v15 }
 0xc88   : > { %2388 = vmatprep.mubr.f32.mxu0 %v2923_v0 }
 0xd43   : > { %v2223_v17 = vpop.f32.mrf.mxu0 }
 0xd44   : > { %v2224_v24 = vadd.f32 %v2223_v17, %v2144_v22 }
 0xd45   : > { %v2225_v36 = vpop.f32.mrf.mxu0 }
 0xd46   : > { %v2226_v26 = vadd.f32 %v2225_v36, %v2144_v22  ;;  %v3555_v30 = vadd.f32 %v2224_v24, %v3475_v42  ;;  %v2508_v36 = vld [vmem:[%s3705_s15] sm:$0xf] }
 0xd47   : > { %v2229_v20 = vpop.f32.mrf.mxu0 }
 0xd48   : > { %v2230_v21 = vadd.f32 %v2229_v20, %v2149_v19  ;;  %v2235_v31 = vadd.f32 %v2226_v26, %v3488_v45 }
 0xd49   : > { %v2231_v23 = vpop.f32.mrf.mxu0 }
 0xd4a   : > { %v3549_v27 = vadd.f32 %v2230_v21, %v3469_v39  ;;  %v2232_v28 = vadd.f32 %v2231_v23, %v2149_v19  ;;  %v3568_v33 = vsel %vm551_vm2, %v2235_v31, 0.0  ;;  %v2509_v39 = vld [vmem:[%s3706_s16] sm:$0xf] }
 0xd4c   : > { %v2237_v29 = vadd.f32 %v2232_v28, %v3480_v44  ;;  %2269 = vrot.lane.b32.xlu1 %v3549_v27, %s3749_s20 }
 0xd4e   : > { %v3560_v32 = vsel %vm551_vm2, %v2237_v29, 0.0 }
 0xd4f   : > { %2271 = vrot.lane.b32.xlu0 %v3560_v32, %s3749_s20 }
 0xd50   : > { %2265 = vrot.lane.b32.xlu1 %v3555_v30, %s3749_s20 }
 0xd53   : > { %2267 = vrot.lane.b32.xlu0 %v3568_v33, %s3749_s20  ;;  %s3645_s20 = scalar_lea.hbm %s3751_s22, %s2751_s19 }
 0xd54   : > { %2253 = vrot.lane.b32.xlu1 %v3549_v27, %s3750_s29 }
 0xd57   : > { %2255 = vrot.lane.b32.xlu0 %v3560_v32, %s3750_s29 }
 0xd58   : > { %2249 = vrot.lane.b32.xlu1 %v3555_v30, %s3750_s29 }
 0xd5b   : > { %2251 = vrot.lane.b32.xlu0 %v3568_v33, %s3750_s29  ;;  %s2865_s29 = sshll.u32 %s2931_s18, 4  ;;  %s2866_s29 = int_to_ptr.vmem [resolvable:$false] %s2865_s29 }
 0xd5c   : > { %2315 = vperm.xlu1 %2851, %v2734_v34   ;;  %s2867_s2 = scalar_lea.vmem %s2866_s29, 512  ;;  %p2868_p0 = scmp.lt.s32.totalorder %s3640_s26, %s2866_s29 }
 0xd5d   : > { %p2869_p1 = scmp.lt.s32.totalorder %s2867_s2, %s2861_s28 }
 0xd5f   : > { %2310 = vperm.xlu0 %2850, %v2733_v35   ;;  %p2870_p2 = por %p2869_p1, %p2868_p0 }
 0xd60   : > { %2418 = vperm.xlu1 %2851, %v2740_v37  }
 0xd61   : > { %p2871_p3 = pnand %p2870_p2, %p2864_p13 }
 0xd63   : > { %2413 = vperm.xlu0 %2850, %v2739_v38  }
 0xd64   : > { %2512 = vperm.xlu1 %2851, %v2509_v39  }
 0xdbe   : > { %v2270_v40 = vpop.permute.xlu1 %2269 }
 0xdc1   : > { %v2272_v41 = vpop.permute.xlu0 %2271 }
 0xdc2   : > { %v2274_v42 = vsel %vm1239_vm11, %v2270_v40, %v2272_v41  ;;  %v2266_v43 = vpop.permute.xlu1 %2265  ;;  %2792 = vmatprep.subr.msk.mxu0 %vm1239_vm11, %v2272_v41 }
 0xdc3   : > { %2345 = vmatpush1.msra.mxu0 %v2274_v42 }
 0xdc5   : > { %v2268_v44 = vpop.permute.xlu0 %2267 }
 0xdc6   : > { %v2273_v45 = vsel %vm1239_vm11, %v2266_v43, %v2268_v44  ;;  %2793 = vmatprep.subr.msk.mxu0 %vm1239_vm11, %v2268_v44  ;;  %v2254_v46 = vpop.permute.xlu1 %2253 }
 0xdc7   : > { %2347 = vmatpush1.msra.mxu0 %v2273_v45 }
 0xdc8   : > { %2794 = vmatprep.subr.msk.mxu0 %vm551_vm2, %v2237_v29 }
 0xdc9   : > { %2349 = vmatpush1.msra.mxu0 %v3549_v27  ;;  %v2256_v47 = vpop.permute.xlu0 %2255 }
 0xdca   : > { %2795 = vmatprep.subr.msk.mxu0 %vm551_vm2, %v2235_v31  ;;  %v2258_v48 = vsel %vm569_vm1, %v2254_v46, %v2256_v47  ;;  %v2250_v49 = vpop.permute.xlu1 %2249 }
 0xdcb   : > { %2351 = vmatpush1.msra.mxu0 %v3555_v30 }
 0xdcc   : > { %2352 = vmatprep.subr.mxu0 %v2258_v48 }
 0xdcd   : > { %2797 = vmatpush1.msk.msra.mxu0 %vm3331_vm12, %v2254_v46  ;;  %v2252_v50 = vpop.permute.xlu0 %2251 }
 0xdce   : > { %v2257_v51 = vsel %vm569_vm1, %v2250_v49, %v2252_v50 }
 0xdcf   : > { %2354 = vmatprep.subr.mxu0 %v2257_v51 }
 0xdd0   : > { %2799 = vmatpush1.msk.msra.mxu0 %vm3331_vm12, %v2250_v49 }
 0xdd1   : > { %2735 = vmatmul.mubr.msk.f32.vlgmr.msra.gmra.mxu0 %vm742_vm6, %v2731_v52 }
 0xdd2   : > { %2394 = vmatprep.mubr.f32.mxu0 %v2923_v0 }
 0xdd5   : > { %2736 = vmatmul.mubr.msk.f32.gmra.mxu0 %vm742_vm6, %v2732_v16 }
 0xdd7   : > { %v2316_v56 = vpop.permute.xlu1 %2315 }
 0xdda   : > { %v2311_v58 = vpop.permute.xlu0 %2310 }
 0xddb   : > { %v2419_v7 = vpop.permute.xlu1 %2418 }
 0xdde   : > { %v2414_v8 = vpop.permute.xlu0 %2413 }
 0xddf   : > { %v2513_v20 = vpop.permute.xlu1 %2512 }
 0xe91   : > { %v2390_v53 = vpop.f32.mrf.mxu0 }
 0xe92   : > { %v2391_v60 = vadd.f32 %v2390_v53, %v2311_v58 }
 0xe93   : > { %v2392_v54 = vpop.f32.mrf.mxu0 }
 0xe94   : > { %v2393_v61 = vadd.f32 %v2392_v54, %v2311_v58  ;;  %v2401_v2 = vmax.f32 %v2391_v60, 0.0 }
 0xe95   : > { %v2396_v55 = vpop.f32.mrf.mxu0 }
 0xe96   : > { %v2397_v59 = vadd.f32 %v2396_v55, %v2316_v56  ;;  %v2402_v1 = vmax.f32 %v2393_v61, 0.0 }
 0xe97   : > { %v2398_v57 = vpop.f32.mrf.mxu0 }
 0xe98   : > { %v2399_v18 = vadd.f32 %v2398_v57, %v2316_v56  ;;  %v2403_v63 = vmax.f32 %v2397_v59, 0.0 }
 0xe9a   : > { %v2404_v62 = vmax.f32 %v2399_v18, 0.0 }
 0xe9c   : > { %2455 = vmatprep.subr.mxu1 %v2404_v62 }
 0xe9d   : > { %2456 = vmatpush1.msra.mxu1 %v2403_v63 }
 0xe9e   : > { %2457 = vmatprep.subr.mxu1 %v2402_v1 }
 0xe9f   : > { %2458 = vmatpush1.msra.mxu1 %v2401_v2 }
 0xea0   : > { %2741 = vmatmul.mubr.msk.f32.vlgmr.msra.gmra.mxu1 %vm844_vm7, %v2737_v3 }
 0xea1   : > { %2497 = vmatprep.mubr.f32.mxu1 %v2923_v0 }
 0xea4   : > { %2742 = vmatmul.mubr.msk.f32.gmra.mxu1 %vm844_vm7, %v2738_v4 }
 0xea5   : > { %2582 = vmatprep.mubr.f32.mxu1 %v2923_v0 }
 0xf60   : > { %v2493_v5 = vpop.f32.mrf.mxu1 }
 0xf61   : > { %v2494_v13 = vadd.f32 %v2493_v5, %v2414_v8 }
 0xf62   : > { %v2495_v6 = vpop.f32.mrf.mxu1 }
 0xf63   : > { %v2496_v11 = vadd.f32 %v2495_v6, %v2414_v8  ;;  %v2504_v0 = vadd.f32 %v2494_v13, %v3555_v30 }
 0xf64   : > { %v2499_v25 = vpop.f32.mrf.mxu1 }
 0xf65   : > { %v2500_v9 = vadd.f32 %v2499_v25, %v2419_v7  ;;  %v2505_v17 = vadd.f32 %v2496_v11, %v3568_v33 }
 0xf66   : > { %v2501_v10 = vpop.f32.mrf.mxu1 }
 0xf67   : > { %v2502_v12 = vadd.f32 %v2501_v10, %v2419_v7  ;;  %v2506_v15 = vadd.f32 %v2500_v9, %v3549_v27 }
 0xf69   : > { %v2507_v14 = vadd.f32 %v2502_v12, %v3560_v32 }
 0xf6b   : > { %2546 = vmatprep.subr.mxu1 %v2507_v14 }
 0xf6c   : > { %2547 = vmatpush1.msra.mxu1 %v2506_v15 }
 0xf6d   : > { %2548 = vmatprep.subr.mxu1 %v2505_v17 }
 0xf6e   : > { %2549 = vmatpush1.msra.mxu1 %v2504_v0 }
 0xf6f   : > { %2743 = vmatmul.mubr.msk.f32.vlgmr.msra.gmra.mxu1 %vm844_vm7, %v2508_v36 }
0x102f   : > { %v2584_v19 = vpop.f32.mrf.mxu1 }
0x1030   : > { %v2585_v22 = vadd.f32 %v2584_v19, %v2513_v20 }
0x1031   : > { %v2586_v21 = vpop.f32.mrf.mxu1 }
0x1032   : > { %v2587_v23 = vadd.f32 %v2586_v21, %v2513_v20 }
0x1034   : > { %v2591_v24 = vcombine.low %v2585_v22, %v2587_v23 }
0x1036   : > { %2744 = vst [vmem:[%s3375_s23 + $0x8] sm:$0xff] %v2591_v24 }
0x1037   : > { %2874 = shalt.err (!%p2871_p3)
}
0x1038   : > { %s2875_s0 = scalar_lea.hbm %s3645_s20, 256  ;;  %s2879_s24 = scalar_lea.hbm %s3751_s22, 512 }
0x1039   : > { %p2876_p4 = scmp.ne.s32.totalorder %s3645_s20, %s2875_s0  ;;  %p2880_p9 = scmp.lt.s32.totalorder %s3645_s20, %s3751_s22 }
0x103a   : > { %p2881_p10 = scmp.lt.s32.totalorder %s2879_s24, %s2875_s0 }
0x103b   : > { %p2877_p7 = pnand %p2876_p4, %p3063_p5 }
0x103c   : > { %p2882_p11 = por %p2881_p10, %p2880_p9 }
0x103d   : > { %p2878_p8 = pneg %p2877_p7 }
0x103f   : > { %p2883_p12 = pnand %p2882_p11, %p2878_p8 }
0x1041   : > { %2886 = shalt.err (!%p2883_p12)
}
0x1042   : > { %s2932_s2 = smov 128   ;;  %s2933_s28 = smov 256  }
0x1043   : > { %s2934_s29 = smov 8  }
0x1044   : > { %2800 = dma.vmem_to_hbm [thread:$0]  (%p3063_p5), %s3640_s26, 256, %s3645_s20, %s3650_s30, %s2932_s2, %s2933_s28, %s2934_s29  }
0x1045 PF: > { %s3752_s23 = sld [smem:[#allocation6_spill]]  ;;  %p2806_p13 = scmp.ge.s32.totalorder %s2921_s27, 2 }
0x1047   : > { %p2803_p0 = pnand %p2806_p13, %p3067_p6 }
0x1049   : > { %p2804_p1 = pneg %p2803_p0 }
0x104b   : > { %s2624_s21 = sand.u32 1, %s3752_s23  }
0x104c   : > { %s2625_s0 = scalar_lea.sflag [#allocation4], %s2624_s21 }
0x104d   : > { %2904 = dma.done.wait (%p2804_p1), %s2625_s0, 256  }
0x104e   : > { %2906 = vsyncadd (%p2804_p1), %s2625_s0, 4294967040  ;;  %s3754_s27 = sld [smem:[#allocation8_spill]]  ;;  %s3757_s24 = smov %s2913_s25 }
0x104f   : > { %s3755_s18 = sld [smem:[#allocation7_spill]] }
0x1050   : > { %s3756_s26 = sld [smem:[#allocation9_spill]] }
0x1054   : > { %p27_p2 = scmp.ge.s32.totalorder %s3754_s27, 4  }
0x1055   : > { %s3758_s25 = smov %s3755_s18 }
0x1056   :  { %29 = sbr.rel (!%p27_p2) target bundleno = 8 (0x8), region = 140 }
0x105b   :  { %2630 = vsyncpa [#allocation4], 1 }
0x105c   :  { %2632 = vsyncpa [#allocation4 + $0x1], 1 }

</bundles_post_ra>
